<compile_context>
chip_gen: v5e
topology: v5e:2x2
jax: 0.10.0
libtpu: 0.0.40
codegen_flags: <defaults>
</compile_context>

<pallas_src>
import functools

import jax
import jax.numpy as jnp
import numpy as np
from jax.experimental import pallas as pl
from jax.experimental.pallas import tpu as pltpu

NUM_ACTIONS = 6
OBS_SHAPE = (4, 36, 36)   # (C, H, W); conv spatial chain 36 -> 8 -> 3 -> 1
BATCH = 2

_VMEM = pl.BlockSpec(memory_space=pltpu.MemorySpace.VMEM)


# ----------------------------------------------------------------------------
# The fused kernel: conv1 + conv2 + conv3 + Linear(64->512) + fc + dueling head
# ----------------------------------------------------------------------------
def _dueling_dqn_kernel(p1_ref, w1_ref, b1_ref, w2c_ref, b2_ref, s2_ref,
                        w3c_ref, b3_ref, wl_ref, bl_ref, wfc_ref, bfc_ref,
                        wva_ref, bva_ref, q_ref, *, batch, num_actions):
    f32 = jnp.float32
    bf16 = jnp.bfloat16

    # conv1 (k=8, s=4): one MXU dot over host-built im2col patches.
    # rows = (b, y, x) over the 8x8 output map, lanes = 32 channels.
    h1 = jnp.dot(p1_ref[...], w1_ref[...], preferred_element_type=f32) + b1_ref[...]
    h1 = jnp.maximum(h1, 0.0).astype(bf16)                       # (B*64, 32)

    # conv2 (k=4, s=2), step 1 ("spread"): contribution of every input position to
    # every of the 16 kernel offsets: (B*64, 32) @ (32, 16*64).
    z = jnp.dot(h1, w2c_ref[...], preferred_element_type=f32).astype(bf16)  # (B*64, 1024)
    # step 2: stack the 16 offset blocks along rows (8-row aligned -> cheap concat)
    # and gather+sum them into the 9 output positions with one constant 0/1
    # selection-matrix dot.  No reshape / transpose / gather ops needed.
    zs = jnp.concatenate([z[:, k * 64:(k + 1) * 64] for k in range(16)], axis=0)
    h2 = jnp.dot(s2_ref[...], zs, preferred_element_type=f32) + b2_ref[...]
    h2 = jnp.maximum(h2, 0.0).astype(bf16)                       # (9B, 64), rows (j, b)

    # conv3 (k=3 on the 3x3 map -> 1x1): spread over the 9 positions, then a static
    # slice-diagonal sum (rows j*B : j*B+B, lanes j*64 : j*64+64).
    y = jnp.dot(h2, w3c_ref[...], preferred_element_type=f32)    # (9B, 9*64)
    h3 = y[0:batch, 0:64]
    for j in range(1, 9):
        h3 = h3 + y[j * batch:(j + 1) * batch, j * 64:(j + 1) * 64]
    h3 = jnp.maximum(h3 + b3_ref[...], 0.0).astype(bf16)         # (B, 64)

    # nature_cnn final Linear(64 -> 512) + ReLU.
    h4 = jnp.dot(h3, wl_ref[...], preferred_element_type=f32) + bl_ref[...]
    h4 = jnp.maximum(h4, 0.0)                                    # (B, 512) f32

    # fc(512 -> 64) + ReLU and the dueling heads kept in f32 for Q-value precision.
    h5 = jnp.dot(h4, wfc_ref[...], preferred_element_type=f32) + bfc_ref[...]
    h5 = jnp.maximum(h5, 0.0)                                    # (B, 64)
    va = jnp.dot(h5, wva_ref[...], preferred_element_type=f32) + bva_ref[...]  # (B, 1+A)

    v = va[:, 0:1]
    a = va[:, 1:1 + num_actions]
    q_ref[...] = (v + (a - jnp.mean(a, axis=1, keepdims=True))).astype(q_ref.dtype)


# ----------------------------------------------------------------------------
# Host glue: conv1 im2col with pure reshape / static slice / concat (no gathers).
# TODO(synk): could be moved in-kernel (raw (B,4,36,36) DMA) to cut activation HBM
# traffic ~3x at large batch; kept host-side since it fuses into one XLA fusion
# with the bf16 cast and avoids 6-D transposes inside Mosaic.
# ----------------------------------------------------------------------------
def _im2col_conv1(x):
    """x:(B,4,36,36) -> (B*8*8, 4*8*8); rows ordered (b,oh,ow), cols (c,kh,kw).

    k=8, stride=4: each patch is exactly two adjacent stride-4 blocks along each
    spatial axis, so im2col is two slices + one concat per axis."""
    b, c, h, w = x.shape
    assert (h, w) == (36, 36) and c == 4, "im2col specialised to the 36x36x4 input"
    xr = x.reshape(b, c, 9, 4, w)
    xh = jnp.concatenate([xr[:, :, 0:8], xr[:, :, 1:9]], axis=3)       # (B,C,OH,KH,W)
    xh = xh.reshape(b, c, 8, 8, 9, 4)
    xw = jnp.concatenate([xh[..., 0:8, :], xh[..., 1:9, :]], axis=5)   # (B,C,OH,KH,OW,KW)
    p = xw.transpose(0, 2, 4, 1, 3, 5)                                  # (B,OH,OW,C,KH,KW)
    return p.reshape(b * 64, c * 64)


# ----------------------------------------------------------------------------
# Constant 0/1 selection matrix for conv2's gather+sum (trace-time numpy).
# ----------------------------------------------------------------------------
@functools.lru_cache(maxsize=None)
def _conv2_selection_matrix(batch):
    """S[(j,b), k*(64B) + b*64 + (2oy+kh)*8 + (2ox+kw)] = 1, j = oy*3+ox, k = kh*4+kw."""
    n = 64 * batch
    s = np.zeros((9 * batch, 16 * n), np.float32)
    for b in range(batch):
        for oy in range(3):
            for ox in range(3):
                row = (oy * 3 + ox) * batch + b
                for kh in range(4):
                    for kw in range(4):
                        k = kh * 4 + kw
                        col = k * n + b * 64 + (2 * oy + kh) * 8 + (2 * ox + kw)
                        s[row, col] = 1.0
    return s


# ----------------------------------------------------------------------------
# Parameter packing (PyTorch layouts in, lane-friendly matmul operands out).
# ----------------------------------------------------------------------------
def pack_params(params, num_actions=NUM_ACTIONS):
    g = lambda k: np.asarray(params[k], np.float32)
    A = num_actions

    # conv1: (OC=32, C=4, 8, 8) -> (256, 32) with rows ordered (c, kh, kw).
    w1 = g("conv1_w").reshape(32, 256).T
    b1 = g("conv1_b").reshape(1, 32)

    # conv2: (64, 32, 4, 4) -> W2cat (32, 16*64), columns ordered (kh, kw, oc).
    w2c = np.transpose(g("conv2_w"), (1, 2, 3, 0)).reshape(32, 16 * 64)
    b2 = g("conv2_b").reshape(1, 64)

    # conv3: (64, 64, 3, 3) -> W3cat (64, 9*64), columns ordered (ky, kx, oc).
    w3c = np.transpose(g("conv3_w"), (1, 2, 3, 0)).reshape(64, 9 * 64)
    b3 = g("conv3_b").reshape(1, 64)

    # nn.Linear stores weight as (out, in) -> transpose for right-multiplication.
    wl = g("cnnfc_w").T                                       # (64, 512)
    bl = g("cnnfc_b").reshape(1, 512)
    wfc = g("fc_w").T                                         # (512, 64)
    bfc = g("fc_b").reshape(1, 64)
    wva = np.concatenate([g("v_w").T, g("a_w").T], axis=1)    # (64, 1 + A)
    bva = np.concatenate([g("v_b").reshape(1, 1), g("a_b").reshape(1, A)], axis=1)

    bf = lambda a: jnp.asarray(a, jnp.bfloat16)
    f32 = lambda a: jnp.asarray(a, jnp.float32)
    return {
        "w1": bf(w1), "b1": f32(b1),
        "w2c": bf(w2c), "b2": f32(b2),
        "w3c": bf(w3c), "b3": f32(b3),
        "wl": bf(wl), "bl": f32(bl),
        # fc + dueling head stay f32 inside the kernel for Q-value precision.
        "wfc": f32(wfc), "bfc": f32(bfc),
        "wva": f32(wva), "bva": f32(bva),
    }


# ----------------------------------------------------------------------------
# Parameter init (deterministic; PyTorch default-style uniform(-1/sqrt(fan_in), ..))
# with real PyTorch layouts: Conv2d OIHW, nn.Linear (out_features, in_features).
# ----------------------------------------------------------------------------
def _unif(key, shape, fan_in):
    bound = 1.0 / jnp.sqrt(jnp.float32(fan_in))
    return jax.random.uniform(key, shape, jnp.float32, -bound, bound)


def init_params(key, num_actions=NUM_ACTIONS):
    ks = jax.random.split(key, 16)
    p = {}
    p["conv1_w"] = _unif(ks[0], (32, 4, 8, 8), 4 * 8 * 8)
    p["conv1_b"] = _unif(ks[1], (32,), 4 * 8 * 8)
    p["conv2_w"] = _unif(ks[2], (64, 32, 4, 4), 32 * 4 * 4)
    p["conv2_b"] = _unif(ks[3], (64,), 32 * 4 * 4)
    p["conv3_w"] = _unif(ks[4], (64, 64, 3, 3), 64 * 3 * 3)
    p["conv3_b"] = _unif(ks[5], (64,), 64 * 3 * 3)
    p["cnnfc_w"] = _unif(ks[6], (512, 64), 64)          # (out, in) torch layout
    p["cnnfc_b"] = _unif(ks[7], (512,), 64)
    p["fc_w"] = _unif(ks[8], (64, 512), 512)
    p["fc_b"] = _unif(ks[9], (64,), 512)
    p["v_w"] = _unif(ks[10], (1, 64), 64)
    p["v_b"] = _unif(ks[11], (1,), 64)
    p["a_w"] = _unif(ks[12], (num_actions, 64), 64)
    p["a_b"] = _unif(ks[13], (num_actions,), 64)
    return p


# ----------------------------------------------------------------------------
# Forward pass (= Network.forward): ONE Pallas launch.
# ----------------------------------------------------------------------------
@jax.jit
def network_forward(packed, x):
    # x: (B, 4, 36, 36) float32 NCHW
    assert x.shape[1:] == OBS_SHAPE
    b = x.shape[0]
    patches1 = _im2col_conv1(x).astype(jnp.bfloat16)                    # (B*64, 256)
    s2 = jnp.asarray(_conv2_selection_matrix(b), jnp.bfloat16)          # (9B, 16*64B)

    q = pl.pallas_call(
        functools.partial(_dueling_dqn_kernel, batch=b, num_actions=NUM_ACTIONS),
        out_shape=jax.ShapeDtypeStruct((b, NUM_ACTIONS), jnp.float32),
        in_specs=[_VMEM] * 14,
        out_specs=_VMEM,
    )(patches1, packed["w1"], packed["b1"], packed["w2c"], packed["b2"], s2,
      packed["w3c"], packed["b3"], packed["wl"], packed["bl"],
      packed["wfc"], packed["bfc"], packed["wva"], packed["bva"])
    return q


# Pure-JAX f32 reference (correctness check only), using PyTorch weight layouts.
def reference_forward(params, x):
    def conv(x, w, b, s):
        y = jax.lax.conv_general_dilated(
            x, w, window_strides=(s, s), padding="VALID",
            dimension_numbers=("NCHW", "OIHW", "NCHW"))
        return jax.nn.relu(y + b[None, :, None, None])

    h = conv(x, params["conv1_w"], params["conv1_b"], 4)
    h = conv(h, params["conv2_w"], params["conv2_b"], 2)
    h = conv(h, params["conv3_w"], params["conv3_b"], 1)
    flat = h.reshape(h.shape[0], -1)
    cnn_out = jax.nn.relu(flat @ params["cnnfc_w"].T + params["cnnfc_b"])
    hfc = jax.nn.relu(cnn_out @ params["fc_w"].T + params["fc_b"])
    v = hfc @ params["v_w"].T + params["v_b"]
    a = hfc @ params["a_w"].T + params["a_b"]
    return v + (a - jnp.mean(a, axis=1, keepdims=True))


# TODO(synk): act()/compute_loss()/save()/load() are RL-training / IO utilities,
# not part of the forward pass; intentionally not kernelized.

if __name__ == "__main__":
    key = jax.random.PRNGKey(0)
    kx, kp = jax.random.split(key)
    x = jax.random.normal(kx, (BATCH,) + OBS_SHAPE, dtype=jnp.float32)
    params = init_params(kp, num_actions=NUM_ACTIONS)
    packed = pack_params(params, num_actions=NUM_ACTIONS)

    q = network_forward(packed, x)
    q = jax.block_until_ready(q)

    q_ref = reference_forward(params, x)
    assert q.shape == (BATCH, NUM_ACTIONS)
    # bf16 MXU operands with f32 accumulation (f32 tail) -> loosened tolerance.
    max_err = float(jnp.max(jnp.abs(q - q_ref)))
    assert jnp.allclose(q, q_ref, atol=2e-2, rtol=2e-2), f"mismatch: max abs err {max_err}"
    print("KERNEL_OK")
</pallas_src>

<mosaic_0001>
module attributes {stable_mosaic.version = 11 : i64} {
  func.func @_dueling_dqn_kernel(%arg0: memref<128x256xbf16, #tpu.memory_space<vmem>>, %arg1: memref<256x32xbf16, #tpu.memory_space<vmem>>, %arg2: memref<1x32xf32, #tpu.memory_space<vmem>>, %arg3: memref<32x1024xbf16, #tpu.memory_space<vmem>>, %arg4: memref<1x64xf32, #tpu.memory_space<vmem>>, %arg5: memref<18x2048xbf16, #tpu.memory_space<vmem>>, %arg6: memref<64x576xbf16, #tpu.memory_space<vmem>>, %arg7: memref<1x64xf32, #tpu.memory_space<vmem>>, %arg8: memref<64x512xbf16, #tpu.memory_space<vmem>>, %arg9: memref<1x512xf32, #tpu.memory_space<vmem>>, %arg10: memref<512x64xf32, #tpu.memory_space<vmem>>, %arg11: memref<1x64xf32, #tpu.memory_space<vmem>>, %arg12: memref<64x7xf32, #tpu.memory_space<vmem>>, %arg13: memref<1x7xf32, #tpu.memory_space<vmem>>, %arg14: memref<2x6xf32, #tpu.memory_space<vmem>>) attributes {dimension_semantics = [], scalar_prefetch = 0 : i64, scratch_operands = 0 : i64, tpu.core_type = #tpu.core_type<tc>} {
    %c0 = arith.constant 0 : index
    %c0_0 = arith.constant 0 : index
    %0 = vector.load %arg0[%c0, %c0_0] : memref<128x256xbf16, #tpu.memory_space<vmem>>, vector<128x256xbf16>
    %c0_1 = arith.constant 0 : index
    %c0_2 = arith.constant 0 : index
    %1 = vector.load %arg1[%c0_1, %c0_2] : memref<256x32xbf16, #tpu.memory_space<vmem>>, vector<256x32xbf16>
    %cst = arith.constant dense<0.000000e+00> : vector<128x32xf32>
    %2 = tpu.matmul %0, %1, %cst {dimension_numbers = #tpu.dot_dimension_numbers<[1], [0], [0], [1], [0, 0, 1, 1], [], []>} : vector<128x256xbf16>, vector<256x32xbf16>, vector<128x32xf32> -> vector<128x32xf32>
    %c0_3 = arith.constant 0 : index
    %c0_4 = arith.constant 0 : index
    %3 = vector.load %arg2[%c0_3, %c0_4] : memref<1x32xf32, #tpu.memory_space<vmem>>, vector<1x32xf32>
    %4 = vector.broadcast %3 : vector<1x32xf32> to vector<128x32xf32>
    %5 = arith.addf %2, %4 : vector<128x32xf32>
    %cst_5 = arith.constant 0.000000e+00 : f32
    %6 = vector.broadcast %cst_5 : f32 to vector<128x32xf32>
    %7 = arith.maximumf %5, %6 : vector<128x32xf32>
    %8 = arith.truncf %7 : vector<128x32xf32> to vector<128x32xbf16>
    %c0_6 = arith.constant 0 : index
    %c0_7 = arith.constant 0 : index
    %9 = vector.load %arg3[%c0_6, %c0_7] : memref<32x1024xbf16, #tpu.memory_space<vmem>>, vector<32x1024xbf16>
    %cst_8 = arith.constant dense<0.000000e+00> : vector<128x1024xf32>
    %10 = tpu.matmul %8, %9, %cst_8 {dimension_numbers = #tpu.dot_dimension_numbers<[1], [0], [0], [1], [0, 0, 1, 1], [], []>} : vector<128x32xbf16>, vector<32x1024xbf16>, vector<128x1024xf32> -> vector<128x1024xf32>
    %11 = arith.truncf %10 : vector<128x1024xf32> to vector<128x1024xbf16>
    %12 = vector.extract_strided_slice %11 {offsets = [0, 0], sizes = [128, 64], strides = [1, 1]} : vector<128x1024xbf16> to vector<128x64xbf16>
    %13 = vector.extract_strided_slice %11 {offsets = [0, 64], sizes = [128, 64], strides = [1, 1]} : vector<128x1024xbf16> to vector<128x64xbf16>
    %14 = vector.extract_strided_slice %11 {offsets = [0, 128], sizes = [128, 64], strides = [1, 1]} : vector<128x1024xbf16> to vector<128x64xbf16>
    %15 = vector.extract_strided_slice %11 {offsets = [0, 192], sizes = [128, 64], strides = [1, 1]} : vector<128x1024xbf16> to vector<128x64xbf16>
    %16 = vector.extract_strided_slice %11 {offsets = [0, 256], sizes = [128, 64], strides = [1, 1]} : vector<128x1024xbf16> to vector<128x64xbf16>
    %17 = vector.extract_strided_slice %11 {offsets = [0, 320], sizes = [128, 64], strides = [1, 1]} : vector<128x1024xbf16> to vector<128x64xbf16>
    %18 = vector.extract_strided_slice %11 {offsets = [0, 384], sizes = [128, 64], strides = [1, 1]} : vector<128x1024xbf16> to vector<128x64xbf16>
    %19 = vector.extract_strided_slice %11 {offsets = [0, 448], sizes = [128, 64], strides = [1, 1]} : vector<128x1024xbf16> to vector<128x64xbf16>
    %20 = vector.extract_strided_slice %11 {offsets = [0, 512], sizes = [128, 64], strides = [1, 1]} : vector<128x1024xbf16> to vector<128x64xbf16>
    %21 = vector.extract_strided_slice %11 {offsets = [0, 576], sizes = [128, 64], strides = [1, 1]} : vector<128x1024xbf16> to vector<128x64xbf16>
    %22 = vector.extract_strided_slice %11 {offsets = [0, 640], sizes = [128, 64], strides = [1, 1]} : vector<128x1024xbf16> to vector<128x64xbf16>
    %23 = vector.extract_strided_slice %11 {offsets = [0, 704], sizes = [128, 64], strides = [1, 1]} : vector<128x1024xbf16> to vector<128x64xbf16>
    %24 = vector.extract_strided_slice %11 {offsets = [0, 768], sizes = [128, 64], strides = [1, 1]} : vector<128x1024xbf16> to vector<128x64xbf16>
    %25 = vector.extract_strided_slice %11 {offsets = [0, 832], sizes = [128, 64], strides = [1, 1]} : vector<128x1024xbf16> to vector<128x64xbf16>
    %26 = vector.extract_strided_slice %11 {offsets = [0, 896], sizes = [128, 64], strides = [1, 1]} : vector<128x1024xbf16> to vector<128x64xbf16>
    %27 = vector.extract_strided_slice %11 {offsets = [0, 960], sizes = [128, 64], strides = [1, 1]} : vector<128x1024xbf16> to vector<128x64xbf16>
    %28 = tpu.concatenate %12, %13, %14, %15, %16, %17, %18, %19, %20, %21, %22, %23, %24, %25, %26, %27 in 0 : vector<128x64xbf16>, vector<128x64xbf16>, vector<128x64xbf16>, vector<128x64xbf16>, vector<128x64xbf16>, vector<128x64xbf16>, vector<128x64xbf16>, vector<128x64xbf16>, vector<128x64xbf16>, vector<128x64xbf16>, vector<128x64xbf16>, vector<128x64xbf16>, vector<128x64xbf16>, vector<128x64xbf16>, vector<128x64xbf16>, vector<128x64xbf16> -> vector<2048x64xbf16>
    %c0_9 = arith.constant 0 : index
    %c0_10 = arith.constant 0 : index
    %29 = vector.load %arg5[%c0_9, %c0_10] : memref<18x2048xbf16, #tpu.memory_space<vmem>>, vector<18x2048xbf16>
    %cst_11 = arith.constant dense<0.000000e+00> : vector<18x64xf32>
    %30 = tpu.matmul %29, %28, %cst_11 {dimension_numbers = #tpu.dot_dimension_numbers<[1], [0], [0], [1], [0, 0, 1, 1], [], []>} : vector<18x2048xbf16>, vector<2048x64xbf16>, vector<18x64xf32> -> vector<18x64xf32>
    %c0_12 = arith.constant 0 : index
    %c0_13 = arith.constant 0 : index
    %31 = vector.load %arg4[%c0_12, %c0_13] : memref<1x64xf32, #tpu.memory_space<vmem>>, vector<1x64xf32>
    %32 = vector.broadcast %31 : vector<1x64xf32> to vector<18x64xf32>
    %33 = arith.addf %30, %32 : vector<18x64xf32>
    %cst_14 = arith.constant 0.000000e+00 : f32
    %34 = vector.broadcast %cst_14 : f32 to vector<18x64xf32>
    %35 = arith.maximumf %33, %34 : vector<18x64xf32>
    %36 = arith.truncf %35 : vector<18x64xf32> to vector<18x64xbf16>
    %c0_15 = arith.constant 0 : index
    %c0_16 = arith.constant 0 : index
    %37 = vector.load %arg6[%c0_15, %c0_16] : memref<64x576xbf16, #tpu.memory_space<vmem>>, vector<64x576xbf16>
    %cst_17 = arith.constant dense<0.000000e+00> : vector<18x576xf32>
    %38 = tpu.matmul %36, %37, %cst_17 {dimension_numbers = #tpu.dot_dimension_numbers<[1], [0], [0], [1], [0, 0, 1, 1], [], []>} : vector<18x64xbf16>, vector<64x576xbf16>, vector<18x576xf32> -> vector<18x576xf32>
    %39 = vector.extract_strided_slice %38 {offsets = [0, 0], sizes = [2, 64], strides = [1, 1]} : vector<18x576xf32> to vector<2x64xf32>
    %40 = vector.extract_strided_slice %38 {offsets = [2, 64], sizes = [2, 64], strides = [1, 1]} : vector<18x576xf32> to vector<2x64xf32>
    %41 = arith.addf %39, %40 : vector<2x64xf32>
    %42 = vector.extract_strided_slice %38 {offsets = [4, 128], sizes = [2, 64], strides = [1, 1]} : vector<18x576xf32> to vector<2x64xf32>
    %43 = arith.addf %41, %42 : vector<2x64xf32>
    %44 = vector.extract_strided_slice %38 {offsets = [6, 192], sizes = [2, 64], strides = [1, 1]} : vector<18x576xf32> to vector<2x64xf32>
    %45 = arith.addf %43, %44 : vector<2x64xf32>
    %46 = vector.extract_strided_slice %38 {offsets = [8, 256], sizes = [2, 64], strides = [1, 1]} : vector<18x576xf32> to vector<2x64xf32>
    %47 = arith.addf %45, %46 : vector<2x64xf32>
    %48 = vector.extract_strided_slice %38 {offsets = [10, 320], sizes = [2, 64], strides = [1, 1]} : vector<18x576xf32> to vector<2x64xf32>
    %49 = arith.addf %47, %48 : vector<2x64xf32>
    %50 = vector.extract_strided_slice %38 {offsets = [12, 384], sizes = [2, 64], strides = [1, 1]} : vector<18x576xf32> to vector<2x64xf32>
    %51 = arith.addf %49, %50 : vector<2x64xf32>
    %52 = vector.extract_strided_slice %38 {offsets = [14, 448], sizes = [2, 64], strides = [1, 1]} : vector<18x576xf32> to vector<2x64xf32>
    %53 = arith.addf %51, %52 : vector<2x64xf32>
    %54 = vector.extract_strided_slice %38 {offsets = [16, 512], sizes = [2, 64], strides = [1, 1]} : vector<18x576xf32> to vector<2x64xf32>
    %55 = arith.addf %53, %54 : vector<2x64xf32>
    %c0_18 = arith.constant 0 : index
    %c0_19 = arith.constant 0 : index
    %56 = vector.load %arg7[%c0_18, %c0_19] : memref<1x64xf32, #tpu.memory_space<vmem>>, vector<1x64xf32>
    %57 = vector.broadcast %56 : vector<1x64xf32> to vector<2x64xf32>
    %58 = arith.addf %55, %57 : vector<2x64xf32>
    %cst_20 = arith.constant 0.000000e+00 : f32
    %59 = vector.broadcast %cst_20 : f32 to vector<2x64xf32>
    %60 = arith.maximumf %58, %59 : vector<2x64xf32>
    %61 = arith.truncf %60 : vector<2x64xf32> to vector<2x64xbf16>
    %c0_21 = arith.constant 0 : index
    %c0_22 = arith.constant 0 : index
    %62 = vector.load %arg8[%c0_21, %c0_22] : memref<64x512xbf16, #tpu.memory_space<vmem>>, vector<64x512xbf16>
    %cst_23 = arith.constant dense<0.000000e+00> : vector<2x512xf32>
    %63 = tpu.matmul %61, %62, %cst_23 {dimension_numbers = #tpu.dot_dimension_numbers<[1], [0], [0], [1], [0, 0, 1, 1], [], []>} : vector<2x64xbf16>, vector<64x512xbf16>, vector<2x512xf32> -> vector<2x512xf32>
    %c0_24 = arith.constant 0 : index
    %c0_25 = arith.constant 0 : index
    %64 = vector.load %arg9[%c0_24, %c0_25] : memref<1x512xf32, #tpu.memory_space<vmem>>, vector<1x512xf32>
    %65 = vector.broadcast %64 : vector<1x512xf32> to vector<2x512xf32>
    %66 = arith.addf %63, %65 : vector<2x512xf32>
    %cst_26 = arith.constant 0.000000e+00 : f32
    %67 = vector.broadcast %cst_26 : f32 to vector<2x512xf32>
    %68 = arith.maximumf %66, %67 : vector<2x512xf32>
    %c0_27 = arith.constant 0 : index
    %c0_28 = arith.constant 0 : index
    %69 = vector.load %arg10[%c0_27, %c0_28] : memref<512x64xf32, #tpu.memory_space<vmem>>, vector<512x64xf32>
    %cst_29 = arith.constant dense<0.000000e+00> : vector<2x64xf32>
    %70 = tpu.matmul %68, %69, %cst_29 {dimension_numbers = #tpu.dot_dimension_numbers<[1], [0], [0], [1], [0, 0, 1, 1], [], []>} : vector<2x512xf32>, vector<512x64xf32>, vector<2x64xf32> -> vector<2x64xf32>
    %c0_30 = arith.constant 0 : index
    %c0_31 = arith.constant 0 : index
    %71 = vector.load %arg11[%c0_30, %c0_31] : memref<1x64xf32, #tpu.memory_space<vmem>>, vector<1x64xf32>
    %72 = vector.broadcast %71 : vector<1x64xf32> to vector<2x64xf32>
    %73 = arith.addf %70, %72 : vector<2x64xf32>
    %cst_32 = arith.constant 0.000000e+00 : f32
    %74 = vector.broadcast %cst_32 : f32 to vector<2x64xf32>
    %75 = arith.maximumf %73, %74 : vector<2x64xf32>
    %c0_33 = arith.constant 0 : index
    %c0_34 = arith.constant 0 : index
    %76 = vector.load %arg12[%c0_33, %c0_34] : memref<64x7xf32, #tpu.memory_space<vmem>>, vector<64x7xf32>
    %cst_35 = arith.constant dense<0.000000e+00> : vector<2x7xf32>
    %77 = tpu.matmul %75, %76, %cst_35 {dimension_numbers = #tpu.dot_dimension_numbers<[1], [0], [0], [1], [0, 0, 1, 1], [], []>} : vector<2x64xf32>, vector<64x7xf32>, vector<2x7xf32> -> vector<2x7xf32>
    %c0_36 = arith.constant 0 : index
    %c0_37 = arith.constant 0 : index
    %78 = vector.load %arg13[%c0_36, %c0_37] : memref<1x7xf32, #tpu.memory_space<vmem>>, vector<1x7xf32>
    %79 = vector.broadcast %78 : vector<1x7xf32> to vector<2x7xf32>
    %80 = arith.addf %77, %79 : vector<2x7xf32>
    %81 = vector.extract_strided_slice %80 {offsets = [0, 0], sizes = [2, 1], strides = [1, 1]} : vector<2x7xf32> to vector<2x1xf32>
    %82 = vector.extract_strided_slice %80 {offsets = [0, 1], sizes = [2, 6], strides = [1, 1]} : vector<2x7xf32> to vector<2x6xf32>
    %cst_38 = arith.constant dense<0.000000e+00> : vector<2xf32>
    %83 = vector.multi_reduction <add>, %82, %cst_38 [1] : vector<2x6xf32> to vector<2xf32>
    %84 = vector.shape_cast %83 : vector<2xf32> to vector<2x1xf32>
    %cst_39 = arith.constant 6.000000e+00 : f32
    %85 = vector.broadcast %cst_39 : f32 to vector<2x1xf32>
    %86 = arith.divf %84, %85 : vector<2x1xf32>
    %87 = vector.broadcast %86 : vector<2x1xf32> to vector<2x6xf32>
    %88 = arith.subf %82, %87 : vector<2x6xf32>
    %89 = vector.broadcast %81 : vector<2x1xf32> to vector<2x6xf32>
    %90 = arith.addf %89, %88 : vector<2x6xf32>
    %c0_40 = arith.constant 0 : index
    %c0_41 = arith.constant 0 : index
    %91 = vector.load %arg14[%c0_40, %c0_41] : memref<2x6xf32, #tpu.memory_space<vmem>>, vector<2x6xf32>
    tpu.vector_store %arg14[%c0_40, %c0_41], %90 {strides = array<i32>} : memref<2x6xf32, #tpu.memory_space<vmem>>, vector<2x6xf32>,
    return
  }
}

</mosaic_0001>

<bundles_post_ra>
// kernel: network_forward.1
= control target key start
LH: loop header
LB: loop body
LE: loop exit
PB: predicated region body
PF: predicated region fallthrough
CT: control target
= control target key end

     0   :  { %s4790_s0 = inlined_call_operand.vmem [shape: bf16[128,256], index: 0, kind: input, shape index: {}]   ;;  %s4791_s1 = inlined_call_operand.vmem [shape: bf16[256,32], index: 1, kind: input, shape index: {}]   ;;  %s4792_s2 = inlined_call_operand.vmem [shape: f32[1,32], index: 2, kind: input, shape index: {}]   ;;  %s4793_s3 = inlined_call_operand.vmem [shape: bf16[32,1024], index: 3, kind: input, shape index: {}]   ;;  %s4794_s4 = inlined_call_operand.vmem [shape: f32[1,64], index: 4, kind: input, shape index: {}]   ;;  %s4795_s5 = inlined_call_operand.vmem [shape: bf16[18,2048], index: 5, kind: input, shape index: {}]   ;;  %s4796_s6 = inlined_call_operand.vmem [shape: bf16[64,576], index: 6, kind: input, shape index: {}]   ;;  %s4797_s7 = inlined_call_operand.vmem [shape: f32[1,64], index: 7, kind: input, shape index: {}]   ;;  %s4798_s8 = inlined_call_operand.vmem [shape: bf16[64,512], index: 8, kind: input, shape index: {}]   ;;  %s4799_s9 = inlined_call_operand.vmem [shape: f32[1,512], index: 9, kind: input, shape index: {}]   ;;  %s4800_s10 = inlined_call_operand.vmem [shape: f32[512,64], index: 10, kind: input, shape index: {}]   ;;  %s4801_s11 = inlined_call_operand.vmem [shape: f32[1,64], index: 11, kind: input, shape index: {}]   ;;  %s4802_s12 = inlined_call_operand.vmem [shape: f32[64,7], index: 12, kind: input, shape index: {}]   ;;  %s4803_s13 = inlined_call_operand.vmem [shape: f32[1,7], index: 13, kind: input, shape index: {}]   ;;  %s4804_s14 = inlined_call_operand.hbm [shape: f32[2,6], index: 14, kind: output, shape index: {}]  }
   0x1   :  { %v3093_v0 = vld [vmem:[%s4791_s1 + $0x38] sm:$0xff]  ;;  %v3092_v2 = vld [vmem:[%s4791_s1 + $0x30] sm:$0xff]  ;;  %v3091_v4 = vld [vmem:[%s4791_s1 + $0x28] sm:$0xff] }
   0x2   :  { %v3101_v1 = vld [vmem:[%s4791_s1 + $0x78] sm:$0xff]  ;;  %277 = vmatpush.bf16.msra.mxu0 %v3093_v0  ;;  %v3100_v3 = vld [vmem:[%s4791_s1 + $0x70] sm:$0xff]  ;;  %v3099_v5 = vld [vmem:[%s4791_s1 + $0x68] sm:$0xff] }
   0x3   :  { %326 = vmatpush.bf16.msra.mxu1 %v3101_v1 }
   0x6   :  { %278 = vmatpush.bf16.msra.mxu0 %v3092_v2 }
   0x7   :  { %327 = vmatpush.bf16.msra.mxu1 %v3100_v3 }
   0x8   :  { %19 = vsyncpa [#allocation3], 0  ;;  %v3090_v6 = vld [vmem:[%s4791_s1 + $0x20] sm:$0xff]  ;;  %v3089_v8 = vld [vmem:[%s4791_s1 + $0x18] sm:$0xff]  ;;  %vm495_vm0 = vcmask 261120   ;;  %vm2073_vm1 = vcmask 523264  }
   0x9   :  { %v3098_v7 = vld [vmem:[%s4791_s1 + $0x60] sm:$0xff]  ;;  %v3097_v9 = vld [vmem:[%s4791_s1 + $0x58] sm:$0xff]  ;;  %v3088_v10 = vld [vmem:[%s4791_s1 + $0x10] sm:$0xff]  ;;  %vm2552_vm2 = vcmask 41984   ;;  %s2582_s17 = sshll.u32 %s4804_s14, 4  ;;  %s2583_s17 = int_to_ptr.hbm [resolvable:$true] %s2582_s17 }
   0xa   :  { %279 = vmatpush.bf16.msra.mxu0 %v3091_v4  ;;  %v3096_v11 = vld [vmem:[%s4791_s1 + $0x50] sm:$0xff]  ;;  %v3087_v12 = vld [vmem:[%s4791_s1 + $0x8] sm:$0xff]  ;;  %v3086_v14 = vld [vmem:[%s4791_s1] sm:$0xff] }
   0xb   :  { %328 = vmatpush.bf16.msra.mxu1 %v3099_v5  ;;  %v3095_v13 = vld [vmem:[%s4791_s1 + $0x48] sm:$0xff]  ;;  %v3094_v15 = vld [vmem:[%s4791_s1 + $0x40] sm:$0xff]  ;;  %v2601_v22 = vld [vmem:[%s4790_s0 + $0x10] sm:$0xf] }
   0xc   :  { %v2593_v16 = vld [vmem:[%s4790_s0] sm:$0xf]  ;;  %v3071_v17 = vld [vmem:[%s4790_s0 + $0x4] sm:$0xf0]  ;;  %v3070_v18 = vld [vmem:[%s4790_s0 + $0x4] sm:$0xf] }
   0xd   :  { %v2595_v19 = vld [vmem:[%s4790_s0 + $0x8] sm:$0xf0]  ;;  %v2594_v20 = vor.u32 %v3071_v17, %v2593_v16  ;;  %v3073_v23 = vld [vmem:[%s4790_s0 + $0x14] sm:$0xf0]  ;;  %v3072_v24 = vld [vmem:[%s4790_s0 + $0x14] sm:$0xf] }
   0xe   :  { %280 = vmatpush.bf16.msra.mxu0 %v3090_v6  ;;  %v2598_v21 = vor.u32 %v3070_v18, %v2595_v19  ;;  %v2603_v25 = vld [vmem:[%s4790_s0 + $0x18] sm:$0xf0]  ;;  %v2602_v26 = vor.u32 %v3073_v23, %v2601_v22  ;;  %v2609_v28 = vld [vmem:[%s4790_s0 + $0x20] sm:$0xf]  ;;  %v3075_v29 = vld [vmem:[%s4790_s0 + $0x24] sm:$0xf0] }
   0xf   :  { %329 = vmatpush.bf16.msra.mxu1 %v3098_v7  ;;  %v2606_v27 = vor.u32 %v3072_v24, %v2603_v25  ;;  %v3074_v30 = vld [vmem:[%s4790_s0 + $0x24] sm:$0xf]  ;;  %v2611_v31 = vld [vmem:[%s4790_s0 + $0x28] sm:$0xf0]  ;;  %v2610_v32 = vor.u32 %v3075_v29, %v2609_v28  ;;  %v2617_v34 = vld [vmem:[%s4790_s0 + $0x30] sm:$0xf] }
  0x10   :  { %v2614_v33 = vor.u32 %v3074_v30, %v2611_v31  ;;  %v3077_v35 = vld [vmem:[%s4790_s0 + $0x34] sm:$0xf0]  ;;  %v3076_v36 = vld [vmem:[%s4790_s0 + $0x34] sm:$0xf]  ;;  %v2619_v37 = vld [vmem:[%s4790_s0 + $0x38] sm:$0xf0] }
  0x11   :  { %v2618_v38 = vor.u32 %v3077_v35, %v2617_v34  ;;  %v2622_v39 = vor.u32 %v3076_v36, %v2619_v37  ;;  %v2625_v40 = vld [vmem:[%s4790_s0 + $0x40] sm:$0xf]  ;;  %v3079_v41 = vld [vmem:[%s4790_s0 + $0x44] sm:$0xf0]  ;;  %v3078_v42 = vld [vmem:[%s4790_s0 + $0x44] sm:$0xf] }
  0x12   :  { %281 = vmatpush.bf16.msra.mxu0 %v3089_v8  ;;  %v2627_v43 = vld [vmem:[%s4790_s0 + $0x48] sm:$0xf0]  ;;  %v2626_v44 = vor.u32 %v3079_v41, %v2625_v40  ;;  %v2633_v46 = vld [vmem:[%s4790_s0 + $0x50] sm:$0xf]  ;;  %v3081_v47 = vld [vmem:[%s4790_s0 + $0x54] sm:$0xf0] }
  0x13   :  { %330 = vmatpush.bf16.msra.mxu1 %v3097_v9  ;;  %v2630_v45 = vor.u32 %v3078_v42, %v2627_v43  ;;  %v3080_v48 = vld [vmem:[%s4790_s0 + $0x54] sm:$0xf]  ;;  %v2635_v49 = vld [vmem:[%s4790_s0 + $0x58] sm:$0xf0]  ;;  %v2634_v50 = vor.u32 %v3081_v47, %v2633_v46  ;;  %v2641_v52 = vld [vmem:[%s4790_s0 + $0x60] sm:$0xf] }
  0x14   :  { %v2638_v51 = vor.u32 %v3080_v48, %v2635_v49  ;;  %v3083_v53 = vld [vmem:[%s4790_s0 + $0x64] sm:$0xf0]  ;;  %v3082_v54 = vld [vmem:[%s4790_s0 + $0x64] sm:$0xf]  ;;  %v2643_v55 = vld [vmem:[%s4790_s0 + $0x68] sm:$0xf0] }
  0x15   :  { %v2642_v56 = vor.u32 %v3083_v53, %v2641_v52  ;;  %v2646_v57 = vor.u32 %v3082_v54, %v2643_v55  ;;  %v2753_v58 = vld [vmem:[%s4793_s3 + $0x40] sm:$0xf]  ;;  %v3110_v60 = vld [vmem:[%s4793_s3 + $0x44] sm:$0xf]  ;;  %v2769_v63 = vld [vmem:[%s4793_s3 + $0x50] sm:$0xf] }
  0x16   :  { %282 = vmatpush.bf16.msra.mxu0 %v3088_v10  ;;  %v3114_v59 = vld [vmem:[%s4793_s3 + $0x5c] sm:$0xf0]  ;;  %v2755_v62 = vld [vmem:[%s4793_s3 + $0x60] sm:$0xf0]  ;;  %v3116_v0 = vld [vmem:[%s4793_s3 + $0x6c] sm:$0xf0] }
  0x17   :  { %331 = vmatpush.bf16.msra.mxu1 %v3096_v11  ;;  %v2754_v61 = vor.u32 %v3114_v59, %v2753_v58  ;;  %v2758_v1 = vor.u32 %v3110_v60, %v2755_v62  ;;  %v2770_v2 = vor.u32 %v3116_v0, %v2769_v63  ;;  %v3112_v3 = vld [vmem:[%s4793_s3 + $0x54] sm:$0xf]  ;;  %v2649_v5 = vld [vmem:[%s4790_s0 + $0x70] sm:$0xf]  ;;  %v3085_v6 = vld [vmem:[%s4790_s0 + $0x74] sm:$0xf0] }
  0x18   :  { %v2771_v4 = vld [vmem:[%s4793_s3 + $0x70] sm:$0xf0]  ;;  %v2651_v8 = vld [vmem:[%s4790_s0 + $0x78] sm:$0xf0]  ;;  %v2721_v10 = vld [vmem:[%s4793_s3] sm:$0xf]  ;;  %v2650_v22 = vor.u32 %v3085_v6, %v2649_v5 }
  0x19   :  { %v3084_v7 = vld [vmem:[%s4790_s0 + $0x74] sm:$0xf]  ;;  %526 = vmatpush.bf16.msra.mxu2 %v2754_v61  ;;  %v2774_v9 = vor.u32 %v3112_v3, %v2771_v4  ;;  %575 = vmatpush.bf16.msra.mxu3 %v2758_v1  ;;  %v3106_v11 = vld [vmem:[%s4793_s3 + $0x1c] sm:$0xf0]  ;;  %v3108_v16 = vld [vmem:[%s4793_s3 + $0x2c] sm:$0xf0] }
  0x1a   :  { %283 = vmatpush.bf16.msra.mxu0 %v3087_v12  ;;  %v3102_v12 = vld [vmem:[%s4793_s3 + $0x4] sm:$0xf]  ;;  %v3104_v19 = vld [vmem:[%s4793_s3 + $0x14] sm:$0xf]  ;;  %v2654_v23 = vor.u32 %v3084_v7, %v2651_v8  ;;  %v2761_v28 = vld [vmem:[%s4793_s3 + $0x48] sm:$0xf] }
  0x1b   :  { %332 = vmatpush.bf16.msra.mxu1 %v3095_v13  ;;  %v2722_v13 = vor.u32 %v3106_v11, %v2721_v10  ;;  %v3115_v29 = vld [vmem:[%s4793_s3 + $0x64] sm:$0xf0]  ;;  %v3111_v31 = vld [vmem:[%s4793_s3 + $0x4c] sm:$0xf] }
  0x1c   :  { %v2762_v30 = vor.u32 %v3115_v29, %v2761_v28 }
  0x1d   :  { %527 = vmatpush.bf16.msra.mxu2 %v2722_v13 }
  0x1e   :  { %284 = vmatpush.bf16.msra.mxu0 %v3086_v14  ;;  %v2723_v14 = vld [vmem:[%s4793_s3 + $0x20] sm:$0xf0] }
  0x1f   :  { %333 = vmatpush.bf16.msra.mxu1 %v3094_v15  ;;  %v2737_v15 = vld [vmem:[%s4793_s3 + $0x10] sm:$0xf]  ;;  %v2726_v17 = vor.u32 %v3102_v12, %v2723_v14  ;;  %v2729_v14 = vld [vmem:[%s4793_s3 + $0x8] sm:$0xf] }
  0x20   :  { %v2738_v18 = vor.u32 %v3108_v16, %v2737_v15  ;;  %v3107_v15 = vld [vmem:[%s4793_s3 + $0x24] sm:$0xf0] }
  0x21   :  { %285 = vmatmul.bf16.vlgmr.msra.gmra.mxu0 %v2594_v20  ;;  %v2739_v20 = vld [vmem:[%s4793_s3 + $0x30] sm:$0xf0]  ;;  %576 = vmatpush.bf16.msra.mxu3 %v2726_v17  ;;  %v2730_v16 = vor.u32 %v3107_v15, %v2729_v14  ;;  %v3103_v17 = vld [vmem:[%s4793_s3 + $0xc] sm:$0xf] }
  0x22   :  { %334 = vmatmul.bf16.vlgmr.msra.gmra.mxu1 %v2598_v21  ;;  %722 = vmatpush.bf16.msrb.mxu0 %v2770_v2  ;;  %v2742_v21 = vor.u32 %v3104_v19, %v2739_v20 }
  0x23   :  { %771 = vmatpush.bf16.msrb.mxu1 %v2774_v9  ;;  %624 = vmatpush.bf16.msrb.mxu2 %v2762_v30 }
  0x26   :  { %723 = vmatpush.bf16.msrb.mxu0 %v2738_v18  ;;  %v2731_v18 = vld [vmem:[%s4793_s3 + $0x28] sm:$0xf0] }
  0x27   :  { %772 = vmatpush.bf16.msrb.mxu1 %v2742_v21  ;;  %v2734_v19 = vor.u32 %v3103_v17, %v2731_v18  ;;  %625 = vmatpush.bf16.msrb.mxu2 %v2730_v16 }
  0x31   :  { %290 = vmatmul.bf16.gmra.mxu0 %v2602_v26  ;;  %v3485_v26 = vld [vmem:[%s4792_s2] ss:$0 sm:$0xff] }
  0x32   :  { %339 = vmatmul.bf16.gmra.mxu1 %v2606_v27 }
  0x41   :  { %295 = vmatmul.bf16.gmra.mxu0 %v2610_v32  ;;  %v2763_v32 = vld [vmem:[%s4793_s3 + $0x68] sm:$0xf0] }
  0x42   :  { %344 = vmatmul.bf16.gmra.mxu1 %v2614_v33  ;;  %v2766_v33 = vor.u32 %v3111_v31, %v2763_v32 }
  0x44   :  { %673 = vmatpush.bf16.msrb.mxu3 %v2766_v33 }
  0x48   :  { %674 = vmatpush.bf16.msrb.mxu3 %v2734_v19 }
  0x51   :  { %300 = vmatmul.bf16.gmra.mxu0 %v2618_v38 }
  0x52   :  { %349 = vmatmul.bf16.gmra.mxu1 %v2622_v39 }
  0x61   :  { %305 = vmatmul.bf16.gmra.mxu0 %v2626_v44 }
  0x62   :  { %354 = vmatmul.bf16.gmra.mxu1 %v2630_v45 }
  0x71   :  { %310 = vmatmul.bf16.gmra.mxu0 %v2634_v50 }
  0x72   :  { %359 = vmatmul.bf16.gmra.mxu1 %v2638_v51 }
  0x81   :  { %315 = vmatmul.bf16.gmra.mxu0 %v2642_v56 }
  0x82   :  { %364 = vmatmul.bf16.gmra.mxu1 %v2646_v57 }
  0x91   :  { %320 = vmatmul.bf16.gmra.mxu0 %v2650_v22 }
  0x92   :  { %369 = vmatmul.bf16.gmra.mxu1 %v2654_v23 }
  0x9e   :  { %v286_v24 = vpop.f32.mrf.mxu0 }
  0x9f   :  { %v335_v25 = vpop.f32.mrf.mxu1  ;;  %v287_v27 = vadd.f32 %v3485_v26, %v286_v24 }
  0xa1   :  { %v336_v36 = vadd.f32 %v335_v25, %v287_v27 }
  0xa3   :  { %v375_v39 = vmax.f32 %v336_v36, 0.0 }
  0xa6   :  { %v288_v34 = vpop.f32.mrf.mxu0 }
  0xa7   :  { %v337_v35 = vpop.f32.mrf.mxu1  ;;  %v289_v37 = vadd.f32 %v3485_v26, %v288_v34 }
  0xa9   :  { %v338_v38 = vadd.f32 %v337_v35, %v289_v37 }
  0xab   :  { %v376_v40 = vmax.f32 %v338_v38, 0.0 }
  0xad   :  { %v3501_v41 = vpack.c.bf16 %v376_v40, %v375_v39 }
  0xae   :  { %v291_v42 = vpop.f32.mrf.mxu0 }
  0xaf   :  { %v340_v43 = vpop.f32.mrf.mxu1  ;;  %2783 = vmatmul.msk.bf16.vlgmr.msra.gmra.mxu2 %vm495_vm0, %v3501_v41  ;;  %2791 = vmatmul.msk.bf16.vlgmr.msra.gmra.mxu3 %vm495_vm0, %v3501_v41  ;;  %v292_v44 = vadd.f32 %v3485_v26, %v291_v42 }
  0xb0   :  { %2815 = vmatmul.msk.bf16.vlgmr.msrb.gmra.mxu0 %vm495_vm0, %v3501_v41  ;;  %2823 = vmatmul.msk.bf16.vlgmr.msrb.gmra.mxu1 %vm495_vm0, %v3501_v41 }
  0xb1   :  { %v341_v47 = vadd.f32 %v340_v43, %v292_v44 }
  0xb3   :  { %v377_v50 = vmax.f32 %v341_v47, 0.0 }
  0xb6   :  { %v293_v45 = vpop.f32.mrf.mxu0 }
  0xb7   :  { %v342_v46 = vpop.f32.mrf.mxu1  ;;  %v294_v48 = vadd.f32 %v3485_v26, %v293_v45 }
  0xb9   :  { %v343_v49 = vadd.f32 %v342_v46, %v294_v48 }
  0xbb   :  { %v378_v51 = vmax.f32 %v343_v49, 0.0 }
  0xbd   :  { %v3513_v52 = vpack.c.bf16 %v378_v51, %v377_v50 }
  0xbe   :  { %v296_v53 = vpop.f32.mrf.mxu0 }
  0xbf   :  { %v345_v54 = vpop.f32.mrf.mxu1  ;;  %2784 = vmatmul.msk.bf16.gmra.mxu2 %vm495_vm0, %v3513_v52  ;;  %2792 = vmatmul.msk.bf16.gmra.mxu3 %vm495_vm0, %v3513_v52  ;;  %v297_v55 = vadd.f32 %v3485_v26, %v296_v53 }
  0xc0   :  { %2816 = vmatmul.msk.bf16.gmra.mxu0 %vm495_vm0, %v3513_v52  ;;  %2824 = vmatmul.msk.bf16.gmra.mxu1 %vm495_vm0, %v3513_v52 }
  0xc1   :  { %v346_v58 = vadd.f32 %v345_v54, %v297_v55 }
  0xc3   :  { %v379_v61 = vmax.f32 %v346_v58, 0.0 }
  0xc6   :  { %v298_v56 = vpop.f32.mrf.mxu0 }
  0xc7   :  { %v347_v57 = vpop.f32.mrf.mxu1  ;;  %v299_v59 = vadd.f32 %v3485_v26, %v298_v56 }
  0xc9   :  { %v348_v60 = vadd.f32 %v347_v57, %v299_v59 }
  0xcb   :  { %v380_v62 = vmax.f32 %v348_v60, 0.0 }
  0xcd   :  { %v3525_v63 = vpack.c.bf16 %v380_v62, %v379_v61 }
  0xce   :  { %v301_v0 = vpop.f32.mrf.mxu0 }
  0xcf   :  { %v350_v1 = vpop.f32.mrf.mxu1  ;;  %2785 = vmatmul.msk.bf16.gmra.mxu2 %vm495_vm0, %v3525_v63  ;;  %2793 = vmatmul.msk.bf16.gmra.mxu3 %vm495_vm0, %v3525_v63  ;;  %v302_v2 = vadd.f32 %v3485_v26, %v301_v0 }
  0xd0   :  { %2817 = vmatmul.msk.bf16.gmra.mxu0 %vm495_vm0, %v3525_v63  ;;  %2825 = vmatmul.msk.bf16.gmra.mxu1 %vm495_vm0, %v3525_v63 }
  0xd1   :  { %v351_v5 = vadd.f32 %v350_v1, %v302_v2  ;;  %v3117_v1 = vld [vmem:[%s4793_s3 + $0x74] sm:$0xf0]  ;;  %v3113_v2 = vld [vmem:[%s4793_s3 + $0x5c] sm:$0xf] }
  0xd3   :  { %v381_v8 = vmax.f32 %v351_v5, 0.0 }
  0xd6   :  { %v303_v3 = vpop.f32.mrf.mxu0 }
  0xd7   :  { %v352_v4 = vpop.f32.mrf.mxu1  ;;  %v304_v6 = vadd.f32 %v3485_v26, %v303_v3 }
  0xd9   :  { %v353_v7 = vadd.f32 %v352_v4, %v304_v6  ;;  %v2779_v4 = vld [vmem:[%s4793_s3 + $0x78] sm:$0xf0] }
  0xda   :  { %v2782_v5 = vor.u32 %v3113_v2, %v2779_v4 }
  0xdb   :  { %v382_v9 = vmax.f32 %v353_v7, 0.0 }
  0xdc   :  { %869 = vmatpush.bf16.msra.mxu3 %v2782_v5 }
  0xdd   :  { %v3537_v10 = vpack.c.bf16 %v382_v9, %v381_v8 }
  0xde   :  { %v306_v11 = vpop.f32.mrf.mxu0 }
  0xdf   :  { %v355_v12 = vpop.f32.mrf.mxu1  ;;  %2786 = vmatmul.msk.bf16.gmra.mxu2 %vm495_vm0, %v3537_v10  ;;  %2794 = vmatmul.msk.bf16.gmra.mxu3 %vm495_vm0, %v3537_v10  ;;  %v307_v13 = vadd.f32 %v3485_v26, %v306_v11 }
  0xe0   :  { %2818 = vmatmul.msk.bf16.gmra.mxu0 %vm495_vm0, %v3537_v10  ;;  %2826 = vmatmul.msk.bf16.gmra.mxu1 %vm495_vm0, %v3537_v10 }
  0xe1   :  { %v356_v22 = vadd.f32 %v355_v12, %v307_v13 }
  0xe3   :  { %v383_v25 = vmax.f32 %v356_v22, 0.0 }
  0xe6   :  { %v308_v20 = vpop.f32.mrf.mxu0 }
  0xe7   :  { %v357_v21 = vpop.f32.mrf.mxu1  ;;  %v309_v23 = vadd.f32 %v3485_v26, %v308_v20 }
  0xe9   :  { %v358_v24 = vadd.f32 %v357_v21, %v309_v23 }
  0xeb   :  { %v384_v27 = vmax.f32 %v358_v24, 0.0 }
  0xed   :  { %v3561_v28 = vpack.c.bf16 %v384_v27, %v383_v25 }
  0xee   :  { %v311_v29 = vpop.f32.mrf.mxu0 }
  0xef   :  { %v360_v30 = vpop.f32.mrf.mxu1  ;;  %2787 = vmatmul.msk.bf16.gmra.mxu2 %vm495_vm0, %v3561_v28  ;;  %2795 = vmatmul.msk.bf16.gmra.mxu3 %vm495_vm0, %v3561_v28  ;;  %v312_v31 = vadd.f32 %v3485_v26, %v311_v29 }
  0xf0   :  { %2819 = vmatmul.msk.bf16.gmra.mxu0 %vm495_vm0, %v3561_v28  ;;  %2827 = vmatmul.msk.bf16.gmra.mxu1 %vm495_vm0, %v3561_v28 }
  0xf1   :  { %v361_v34 = vadd.f32 %v360_v30, %v312_v31 }
  0xf3   :  { %v385_v37 = vmax.f32 %v361_v34, 0.0 }
  0xf6   :  { %v313_v32 = vpop.f32.mrf.mxu0 }
  0xf7   :  { %v362_v33 = vpop.f32.mrf.mxu1  ;;  %v314_v35 = vadd.f32 %v3485_v26, %v313_v32 }
  0xf9   :  { %v363_v36 = vadd.f32 %v362_v33, %v314_v35 }
  0xfb   :  { %v386_v38 = vmax.f32 %v363_v36, 0.0 }
  0xfd   :  { %v3573_v39 = vpack.c.bf16 %v386_v38, %v385_v37 }
  0xfe   :  { %v316_v40 = vpop.f32.mrf.mxu0 }
  0xff   :  { %v365_v42 = vpop.f32.mrf.mxu1  ;;  %2788 = vmatmul.msk.bf16.gmra.mxu2 %vm495_vm0, %v3573_v39  ;;  %2796 = vmatmul.msk.bf16.gmra.mxu3 %vm495_vm0, %v3573_v39  ;;  %v317_v43 = vadd.f32 %v3485_v26, %v316_v40 }
 0x100   :  { %2820 = vmatmul.msk.bf16.gmra.mxu0 %vm495_vm0, %v3573_v39  ;;  %2828 = vmatmul.msk.bf16.gmra.mxu1 %vm495_vm0, %v3573_v39 }
 0x101   :  { %v366_v46 = vadd.f32 %v365_v42, %v317_v43 }
 0x103   :  { %v387_v49 = vmax.f32 %v366_v46, 0.0 }
 0x106   :  { %v318_v44 = vpop.f32.mrf.mxu0 }
 0x107   :  { %v367_v45 = vpop.f32.mrf.mxu1  ;;  %v319_v47 = vadd.f32 %v3485_v26, %v318_v44 }
 0x109   :  { %v368_v48 = vadd.f32 %v367_v45, %v319_v47 }
 0x10b   :  { %v388_v50 = vmax.f32 %v368_v48, 0.0 }
 0x10d   :  { %v3585_v51 = vpack.c.bf16 %v388_v50, %v387_v49 }
 0x10e   :  { %v321_v53 = vpop.f32.mrf.mxu0 }
 0x10f   :  { %v370_v54 = vpop.f32.mrf.mxu1  ;;  %2789 = vmatmul.msk.bf16.gmra.mxu2 %vm495_vm0, %v3585_v51  ;;  %2797 = vmatmul.msk.bf16.gmra.mxu3 %vm495_vm0, %v3585_v51  ;;  %v322_v55 = vadd.f32 %v3485_v26, %v321_v53 }
 0x110   :  { %2821 = vmatmul.msk.bf16.gmra.mxu0 %vm495_vm0, %v3585_v51  ;;  %2829 = vmatmul.msk.bf16.gmra.mxu1 %vm495_vm0, %v3585_v51 }
 0x111   :  { %v371_v57 = vadd.f32 %v370_v54, %v322_v55 }
 0x113   :  { %v389_v61 = vmax.f32 %v371_v57, 0.0 }
 0x116   :  { %v323_v56 = vpop.f32.mrf.mxu0 }
 0x117   :  { %v324_v58 = vadd.f32 %v3485_v26, %v323_v56  ;;  %v372_v59 = vpop.f32.mrf.mxu1  ;;  %v2777_v26 = vld [vmem:[%s4793_s3 + $0x58] sm:$0xf] }
 0x118   :  { %v2778_v3 = vor.u32 %v3117_v1, %v2777_v26 }
 0x119   :  { %v373_v60 = vadd.f32 %v372_v59, %v324_v58 }
 0x11a   :  { %820 = vmatpush.bf16.msra.mxu2 %v2778_v3 }
 0x11b   :  { %v390_v62 = vmax.f32 %v373_v60, 0.0 }
 0x11d   :  { %v3597_v0 = vpack.c.bf16 %v390_v62, %v389_v61 }
 0x11f   :  { %2790 = vmatmul.msk.bf16.gmra.mxu2 %vm495_vm0, %v3597_v0  ;;  %2798 = vmatmul.msk.bf16.gmra.mxu3 %vm495_vm0, %v3597_v0 }
 0x120   :  { %2822 = vmatmul.msk.bf16.gmra.mxu0 %vm495_vm0, %v3597_v0  ;;  %2830 = vmatmul.msk.bf16.gmra.mxu1 %vm495_vm0, %v3597_v0 }
 0x12d   :  { %v725_v6 = vpop.f32.mrf.mxu0  ;;  %v774_v7 = vpop.f32.mrf.mxu1 }
 0x12e   :  { %v3619_v8 = vpack.c.bf16 %v774_v7, %v725_v6 }
 0x12f   :  { %2799 = vmatmul.msk.bf16.vlgmr.msrb.gmra.mxu2 %vm495_vm0, %v3501_v41  ;;  %2807 = vmatmul.msk.bf16.vlgmr.msrb.gmra.mxu3 %vm495_vm0, %v3501_v41 }
 0x130   :  { %v1304_v16 = vunpack.c.h.b16 %v3619_v8 }
 0x132   :  { %v529_v9 = vpop.f32.mrf.mxu2  ;;  %v578_v11 = vpop.f32.mrf.mxu3 }
 0x133   :  { %v912_v12 = vpack.c.bf16 %v578_v11, %v529_v9  ;;  %v2745_v9 = vld [vmem:[%s4793_s3 + $0x18] sm:$0xf] }
 0x134   :  { %v3109_v11 = vld [vmem:[%s4793_s3 + $0x34] sm:$0xf0] }
 0x135   :  { %v727_v13 = vpop.f32.mrf.mxu0  ;;  %v776_v14 = vpop.f32.mrf.mxu1  ;;  %v992_v22 = vunpack.c.l.b16 %v912_v12  ;;  %v1048_v23 = vunpack.c.h.b16 %v912_v12  ;;  %v3105_v12 = vld [vmem:[%s4793_s3 + $0x1c] sm:$0xf] }
 0x136   :  { %v3625_v15 = vpack.c.bf16 %v776_v14, %v727_v13  ;;  %v2746_v13 = vor.u32 %v3109_v11, %v2745_v9  ;;  %v2747_v14 = vld [vmem:[%s4793_s3 + $0x38] sm:$0xf0]  ;;  %s3210_s3 = smov 64  }
 0x138   :  { %v1305_v17 = vunpack.c.h.b16 %v3625_v15  ;;  %821 = vmatpush.bf16.msra.mxu2 %v2746_v13 }
 0x13a   :  { %v531_v18 = vpop.f32.mrf.mxu2  ;;  %v580_v19 = vpop.f32.mrf.mxu3  ;;  %v3629_v20 = vpack.c.b16 %v1305_v17, %v1304_v16 }
 0x13b   :  { %v916_v21 = vpack.c.bf16 %v580_v19, %v531_v18  ;;  %v2750_v18 = vor.u32 %v3105_v12, %v2747_v14 }
 0x13c   :  { %4808 = vst [vmem:[#allocation5_spill] sm:$0xff] %v3629_v20 }
 0x13d   :  { %v993_v24 = vunpack.c.l.b16 %v916_v21  ;;  %v1049_v25 = vunpack.c.h.b16 %v916_v21  ;;  %v730_v27 = vpop.f32.mrf.mxu0  ;;  %v779_v29 = vpop.f32.mrf.mxu1  ;;  %870 = vmatpush.bf16.msra.mxu3 %v2750_v18 }
 0x13e   :  { %v3631_v30 = vpack.c.bf16 %v779_v29, %v730_v27 }
 0x13f   :  { %2800 = vmatmul.msk.bf16.gmra.mxu2 %vm495_vm0, %v3513_v52  ;;  %2808 = vmatmul.msk.bf16.gmra.mxu3 %vm495_vm0, %v3513_v52  ;;  %v3637_v31 = vpack.c.b16 %v993_v24, %v992_v22  ;;  %v3639_v32 = vpack.c.b16 %v1049_v25, %v1048_v23 }
 0x140   :  { %v1306_v40 = vunpack.c.h.b16 %v3631_v30 }
 0x142   :  { %v534_v33 = vpop.f32.mrf.mxu2  ;;  %v583_v34 = vpop.f32.mrf.mxu3 }
 0x143   :  { %v920_v35 = vpack.c.bf16 %v583_v34, %v534_v33 }
 0x145   :  { %v732_v36 = vpop.f32.mrf.mxu0  ;;  %v781_v37 = vpop.f32.mrf.mxu1  ;;  %v994_v47 = vunpack.c.l.b16 %v920_v35  ;;  %v1050_v48 = vunpack.c.h.b16 %v920_v35 }
 0x146   :  { %v3641_v38 = vpack.c.bf16 %v781_v37, %v732_v36 }
 0x148   :  { %v1307_v42 = vunpack.c.h.b16 %v3641_v38 }
 0x14a   :  { %v536_v43 = vpop.f32.mrf.mxu2  ;;  %v585_v44 = vpop.f32.mrf.mxu3  ;;  %v3645_v45 = vpack.c.b16 %v1307_v42, %v1306_v40 }
 0x14b   :  { %v924_v46 = vpack.c.bf16 %v585_v44, %v536_v43 }
 0x14c   :  { %4809 = vst [vmem:[#allocation6_spill] sm:$0xff] %v3645_v45 }
 0x14d   :  { %v995_v49 = vunpack.c.l.b16 %v924_v46  ;;  %v1051_v50 = vunpack.c.h.b16 %v924_v46  ;;  %v735_v53 = vpop.f32.mrf.mxu0  ;;  %v784_v54 = vpop.f32.mrf.mxu1 }
 0x14e   :  { %v3647_v55 = vpack.c.bf16 %v784_v54, %v735_v53 }
 0x14f   :  { %2801 = vmatmul.msk.bf16.gmra.mxu2 %vm495_vm0, %v3525_v63  ;;  %2809 = vmatmul.msk.bf16.gmra.mxu3 %vm495_vm0, %v3525_v63  ;;  %v3653_v56 = vpack.c.b16 %v1051_v50, %v1050_v48  ;;  %v3655_v57 = vpack.c.b16 %v995_v49, %v994_v47 }
 0x150   :  { %v1308_v26 = vunpack.c.h.b16 %v3647_v55 }
 0x152   :  { %v539_v58 = vpop.f32.mrf.mxu2  ;;  %v588_v59 = vpop.f32.mrf.mxu3 }
 0x153   :  { %v3699_v49 = vpack.c.bf16 %v588_v59, %v539_v58 }
 0x155   :  { %v737_v60 = vpop.f32.mrf.mxu0  ;;  %v786_v61 = vpop.f32.mrf.mxu1 }
 0x156   :  { %v3657_v62 = vpack.c.bf16 %v786_v61, %v737_v60  ;;  %v996_v60 = vunpack.c.l.b16 %v3699_v49 }
 0x158   :  { %v1309_v1 = vunpack.c.h.b16 %v3657_v62 }
 0x15a   :  { %v541_v2 = vpop.f32.mrf.mxu2  ;;  %v590_v3 = vpop.f32.mrf.mxu3  ;;  %v3661_v4 = vpack.c.b16 %v1309_v1, %v1308_v26 }
 0x15b   :  { %v3689_v46 = vpack.c.bf16 %v590_v3, %v541_v2 }
 0x15d   :  { %v740_v5 = vpop.f32.mrf.mxu0  ;;  %v789_v6 = vpop.f32.mrf.mxu1  ;;  %v997_v54 = vunpack.c.l.b16 %v3689_v46 }
 0x15e   :  { %v3663_v7 = vpack.c.bf16 %v789_v6, %v740_v5 }
 0x15f   :  { %2802 = vmatmul.msk.bf16.gmra.mxu2 %vm495_vm0, %v3537_v10  ;;  %2810 = vmatmul.msk.bf16.gmra.mxu3 %vm495_vm0, %v3537_v10  ;;  %v3707_v2 = vpack.c.b16 %v997_v54, %v996_v60 }
 0x160   :  { %v1310_v23 = vunpack.c.h.b16 %v3663_v7 }
 0x162   :  { %v544_v16 = vpop.f32.mrf.mxu2  ;;  %v593_v17 = vpop.f32.mrf.mxu3 }
 0x163   :  { %v936_v25 = vpack.c.bf16 %v593_v17, %v544_v16 }
 0x165   :  { %v742_v19 = vpop.f32.mrf.mxu0  ;;  %v791_v21 = vpop.f32.mrf.mxu1  ;;  %v998_v35 = vunpack.c.l.b16 %v936_v25  ;;  %v1054_v36 = vunpack.c.h.b16 %v936_v25 }
 0x166   :  { %v3681_v22 = vpack.c.bf16 %v791_v21, %v742_v19 }
 0x168   :  { %v1311_v24 = vunpack.c.h.b16 %v3681_v22 }
 0x16a   :  { %v546_v27 = vpop.f32.mrf.mxu2  ;;  %v595_v29 = vpop.f32.mrf.mxu3  ;;  %v3685_v33 = vpack.c.b16 %v1311_v24, %v1310_v23 }
 0x16b   :  { %v940_v34 = vpack.c.bf16 %v595_v29, %v546_v27 }
 0x16c   :  { %4810 = vst [vmem:[#allocation7_spill] sm:$0xff] %v3685_v33 }
 0x16d   :  { %v1055_v37 = vunpack.c.h.b16 %v940_v34  ;;  %v745_v40 = vpop.f32.mrf.mxu0  ;;  %v794_v42 = vpop.f32.mrf.mxu1  ;;  %v999_v43 = vunpack.c.l.b16 %v940_v34 }
 0x16e   :  { %v3687_v44 = vpack.c.bf16 %v794_v42, %v745_v40 }
 0x16f   :  { %2803 = vmatmul.msk.bf16.gmra.mxu2 %vm495_vm0, %v3561_v28  ;;  %2811 = vmatmul.msk.bf16.gmra.mxu3 %vm495_vm0, %v3561_v28  ;;  %v3695_v47 = vpack.c.b16 %v999_v43, %v998_v35  ;;  %v3697_v48 = vpack.c.b16 %v1055_v37, %v1054_v36 }
 0x170   :  { %v1312_v3 = vunpack.c.h.b16 %v3687_v44 }
 0x171   :  { %1030 = vrot.lane.b32.xlu2 %v3695_v47, %s3210_s3 }
 0x172   :  { %v549_v50 = vpop.f32.mrf.mxu2  ;;  %v598_v53 = vpop.f32.mrf.mxu3 }
 0x173   :  { %v3735_v43 = vpack.c.bf16 %v598_v53, %v549_v50 }
 0x175   :  { %v747_v61 = vpop.f32.mrf.mxu0  ;;  %v796_v26 = vpop.f32.mrf.mxu1 }
 0x176   :  { %v3705_v1 = vpack.c.bf16 %v796_v26, %v747_v61 }
 0x178   :  { %v1313_v58 = vunpack.c.h.b16 %v3705_v1 }
 0x179   :  { %1028 = vrot.lane.b32.xlu2 %v3707_v2, %s3210_s3 }
 0x17a   :  { %v551_v59 = vpop.f32.mrf.mxu2  ;;  %v600_v5 = vpop.f32.mrf.mxu3  ;;  %v3713_v6 = vpack.c.b16 %v1313_v58, %v1312_v3  ;;  %v1000_v3 = vunpack.c.l.b16 %v3735_v43 }
 0x17b   :  { %v3727_v40 = vpack.c.bf16 %v600_v5, %v551_v59 }
 0x17d   :  { %v750_v9 = vpop.f32.mrf.mxu0  ;;  %v799_v11 = vpop.f32.mrf.mxu1  ;;  %v1001_v61 = vunpack.c.l.b16 %v3727_v40 }
 0x17e   :  { %v3719_v14 = vpack.c.bf16 %v799_v11, %v750_v9 }
 0x17f   :  { %2804 = vmatmul.msk.bf16.gmra.mxu2 %vm495_vm0, %v3573_v39  ;;  %2812 = vmatmul.msk.bf16.gmra.mxu3 %vm495_vm0, %v3573_v39  ;;  %v3741_v9 = vpack.c.b16 %v1001_v61, %v1000_v3 }
 0x180   :  { %v1314_v19 = vunpack.c.h.b16 %v3719_v14 }
 0x182   :  { %v554_v12 = vpop.f32.mrf.mxu2  ;;  %v603_v13 = vpop.f32.mrf.mxu3 }
 0x183   :  { %v952_v23 = vpack.c.bf16 %v603_v13, %v554_v12 }
 0x185   :  { %v752_v16 = vpop.f32.mrf.mxu0  ;;  %v801_v17 = vpop.f32.mrf.mxu1  ;;  %v1002_v34 = vunpack.c.l.b16 %v952_v23 }
 0x186   :  { %v3721_v18 = vpack.c.bf16 %v801_v17, %v752_v16 }
 0x188   :  { %v1315_v21 = vunpack.c.h.b16 %v3721_v18 }
 0x18a   :  { %v556_v24 = vpop.f32.mrf.mxu2  ;;  %v605_v25 = vpop.f32.mrf.mxu3  ;;  %v3725_v27 = vpack.c.b16 %v1315_v21, %v1314_v19 }
 0x18b   :  { %v956_v29 = vpack.c.bf16 %v605_v25, %v556_v24 }
 0x18d   :  { %v755_v35 = vpop.f32.mrf.mxu0  ;;  %v804_v36 = vpop.f32.mrf.mxu1  ;;  %v1003_v37 = vunpack.c.l.b16 %v956_v29  ;;  %v1059_v24 = vunpack.c.h.b16 %v956_v29 }
 0x18e   :  { %v962_v26 = vpack.c.bf16 %v804_v36, %v755_v35 }
 0x18f   :  { %2805 = vmatmul.msk.bf16.gmra.mxu2 %vm495_vm0, %v3585_v51  ;;  %2813 = vmatmul.msk.bf16.gmra.mxu3 %vm495_vm0, %v3585_v51  ;;  %v3733_v42 = vpack.c.b16 %v1003_v37, %v1002_v34  ;;  %v1058_v34 = vunpack.c.h.b16 %v952_v23  ;;  %v1053_v23 = vunpack.c.h.b16 %v3689_v46 }
 0x190   :  { %v1316_v11 = vunpack.c.h.b16 %v962_v26 }
 0x191   :  { %1034 = vrot.lane.b32.xlu1 %v3733_v42, %s3210_s3  ;;  %v3753_v61 = vpack.c.b16 %v1059_v24, %v1058_v34  ;;  %v1052_v24 = vunpack.c.h.b16 %v3699_v49  ;;  %v1260_v34 = vunpack.c.l.b16 %v962_v26  ;;  %v1258_v26 = vunpack.c.l.b16 %v3719_v14 }
 0x192   :  { %v559_v54 = vpop.f32.mrf.mxu2  ;;  %v608_v60 = vpop.f32.mrf.mxu3 }
 0x195   :  { %v757_v58 = vpop.f32.mrf.mxu0  ;;  %v806_v59 = vpop.f32.mrf.mxu1 }
 0x196   :  { %v966_v5 = vpack.c.bf16 %v806_v59, %v757_v58 }
 0x198   :  { %v1317_v12 = vunpack.c.h.b16 %v966_v5  ;;  %v1261_v20 = vunpack.c.l.b16 %v966_v5 }
 0x199   :  { %1032 = vrot.lane.b32.xlu1 %v3741_v9, %s3210_s3 }
 0x19a   :  { %v561_v50 = vpop.f32.mrf.mxu2  ;;  %v610_v53 = vpop.f32.mrf.mxu3  ;;  %v3745_v13 = vpack.c.b16 %v1317_v12, %v1316_v11 }
 0x19d   :  { %v760_v16 = vpop.f32.mrf.mxu0  ;;  %v809_v17 = vpop.f32.mrf.mxu1 }
 0x19e   :  { %v970_v25 = vpack.c.bf16 %v809_v17, %v760_v16 }
 0x19f   :  { %2806 = vmatmul.msk.bf16.gmra.mxu2 %vm495_vm0, %v3597_v0  ;;  %2814 = vmatmul.msk.bf16.gmra.mxu3 %vm495_vm0, %v3597_v0 }
 0x1a0   :  { %v1262_v3 = vunpack.c.l.b16 %v970_v25  ;;  %v1318_v58 = vunpack.c.h.b16 %v970_v25  ;;  %v3763_v25 = vpack.c.bf16 %v610_v53, %v561_v50 }
 0x1a1   :  { %1024 = vrot.lane.b32.xlu1 %v3637_v31, %s3210_s3 }
 0x1a2   :  { %v564_v19 = vpop.f32.mrf.mxu2  ;;  %v613_v21 = vpop.f32.mrf.mxu3  ;;  %v1005_v50 = vunpack.c.l.b16 %v3763_v25 }
 0x1a3   :  { %v968_v12 = vpack.c.bf16 %v613_v21, %v564_v19 }
 0x1a5   :  { %v762_v35 = vpop.f32.mrf.mxu0  ;;  %v811_v36 = vpop.f32.mrf.mxu1  ;;  %v1006_v19 = vunpack.c.l.b16 %v968_v12  ;;  %v1062_v21 = vunpack.c.h.b16 %v968_v12 }
 0x1a6   :  { %v974_v37 = vpack.c.bf16 %v811_v36, %v762_v35  ;;  %v1259_v36 = vunpack.c.l.b16 %v3721_v18 }
 0x1a8   :  { %v1263_v59 = vunpack.c.l.b16 %v974_v37  ;;  %v1319_v11 = vunpack.c.h.b16 %v974_v37  ;;  %v3767_v37 = vpack.c.bf16 %v608_v60, %v559_v54  ;;  %v3789_v14 = vpack.c.b16 %v1259_v36, %v1258_v26 }
 0x1a9   :  { %1090 = vrot.lane.b32.xlu1 %v3753_v61, %s3210_s3  ;;  %v1057_v60 = vunpack.c.h.b16 %v3727_v40  ;;  %v1248_v26 = vunpack.c.l.b16 %v3619_v8 }
 0x1aa   :  { %v3757_v33 = vpack.c.b16 %v1263_v59, %v1262_v3  ;;  %v566_v45 = vpop.f32.mrf.mxu2  ;;  %v615_v29 = vpop.f32.mrf.mxu3  ;;  %v3759_v16 = vpack.c.b16 %v1319_v11, %v1318_v58  ;;  %v3769_v3 = vpack.c.b16 %v1261_v20, %v1260_v34  ;;  %v1257_v20 = vunpack.c.l.b16 %v3705_v1 }
 0x1ab   :  { %v972_v17 = vpack.c.bf16 %v615_v29, %v566_v45  ;;  %v3775_v45 = vpack.c.b16 %v1053_v23, %v1052_v24  ;;  %v1256_v58 = vunpack.c.l.b16 %v3687_v44  ;;  %v1056_v11 = vunpack.c.h.b16 %v3735_v43 }
 0x1ac   :  { %1796 = vmatpush.bf16.msrb.mxu2 %v3757_v33  ;;  %v1255_v1 = vunpack.c.l.b16 %v3681_v22  ;;  %v1254_v23 = vunpack.c.l.b16 %v3663_v7  ;;  %v1253_v44 = vunpack.c.l.b16 %v3657_v62  ;;  %v1252_v24 = vunpack.c.l.b16 %v3647_v55 }
 0x1ad   :  { %v1063_v35 = vunpack.c.h.b16 %v972_v17  ;;  %v1007_v5 = vunpack.c.l.b16 %v972_v17  ;;  %v3796_v12 = vpack.c.b16 %v1257_v20, %v1256_v58  ;;  %v3798_v29 = vpack.c.b16 %v1057_v60, %v1056_v11 }
 0x1ae   :  { %v3807_v43 = vpack.c.b16 %v1255_v1, %v1254_v23  ;;  %v3813_v62 = vpack.c.b16 %v1253_v44, %v1252_v24 }
 0x1af   :  { %2831 = vmatmul.msk.bf16.vlgmr.msra.gmra.mxu2 %vm495_vm0, %v3501_v41  ;;  %2839 = vmatmul.msk.bf16.vlgmr.msra.gmra.mxu3 %vm495_vm0, %v3501_v41  ;;  %v3777_v46 = vpack.c.b16 %v1063_v35, %v1062_v21  ;;  %v1015_v49 = vpack.c.b16 %v1007_v5, %v1006_v19  ;;  %v1004_v41 = vunpack.c.l.b16 %v3767_v37  ;;  %v1251_v35 = vunpack.c.l.b16 %v3641_v38 }
 0x1b0   :  { %1797 = vmatpush.bf16.msrb.mxu2 %v3769_v3  ;;  %v1250_v5 = vunpack.c.l.b16 %v3631_v30  ;;  %v1249_v38 = vunpack.c.l.b16 %v3625_v15  ;;  %v1061_v30 = vunpack.c.h.b16 %v3763_v25 }
 0x1b1   :  { %1084 = vrot.lane.b32.xlu1 %v3775_v45, %s3210_s3  ;;  %1094 = vrot.lane.b32.xlu2 %v3777_v46, %s3210_s3  ;;  %v1014_v59 = vpack.c.b16 %v1005_v50, %v1004_v41  ;;  %v1060_v50 = vunpack.c.h.b16 %v3767_v37 }
 0x1b2   :  { %1038 = vrot.lane.b32.xlu0 %v1015_v49, %s3210_s3  ;;  %1652 = vmatpush.bf16.msra.mxu0 %v1015_v49  ;;  %v627_v18 = vpop.f32.mrf.mxu2  ;;  %v676_v54 = vpop.f32.mrf.mxu3  ;;  %v3831_v36 = vpack.c.b16 %v1251_v35, %v1250_v5  ;;  %v3838_v15 = vpack.c.b16 %v1249_v38, %v1248_v26 }
 0x1b3   :  { %v913_v53 = vpack.c.bf16 %v676_v54, %v627_v18 }
 0x1b4   :  { %1798 = vmatpush.bf16.msrb.mxu2 %v3789_v14 }
 0x1b5   :  { %v1120_v7 = vunpack.c.l.b16 %v913_v53  ;;  %v1176_v34 = vunpack.c.h.b16 %v913_v53 }
 0x1b6   :  { %1653 = vmatpush.bf16.msra.mxu0 %v1014_v59 }
 0x1b8   :  { %1799 = vmatpush.bf16.msrb.mxu2 %v3796_v12 }
 0x1b9   :  { %1088 = vrot.lane.b32.xlu2 %v3798_v29, %s3210_s3 }
 0x1ba   :  { %1036 = vrot.lane.b32.xlu0 %v1014_v59, %s3210_s3  ;;  %1654 = vmatpush.bf16.msra.mxu0 %v3733_v42  ;;  %v629_v40 = vpop.f32.mrf.mxu2  ;;  %v678_v22 = vpop.f32.mrf.mxu3 }
 0x1bb   :  { %v917_v17 = vpack.c.bf16 %v678_v22, %v629_v40 }
 0x1bc   :  { %1800 = vmatpush.bf16.msrb.mxu2 %v3807_v43 }
 0x1bd   :  { %v1121_v19 = vunpack.c.l.b16 %v917_v17  ;;  %v1177_v21 = vunpack.c.h.b16 %v917_v17 }
 0x1be   :  { %1655 = vmatpush.bf16.msra.mxu0 %v3741_v9 }
 0x1bf   :  { %2832 = vmatmul.msk.bf16.gmra.mxu2 %vm495_vm0, %v3513_v52  ;;  %2840 = vmatmul.msk.bf16.gmra.mxu3 %vm495_vm0, %v3513_v52  ;;  %v3819_v42 = vpack.c.b16 %v1121_v19, %v1120_v7  ;;  %v3821_v55 = vpack.c.b16 %v1177_v21, %v1176_v34 }
 0x1c0   :  { %1801 = vmatpush.bf16.msrb.mxu2 %v3813_v62 }
 0x1c1   :  { %1082 = vrot.lane.b32.xlu2 %v3653_v56, %s3210_s3 }
 0x1c2   :  { %1026 = vrot.lane.b32.xlu0 %v3655_v57, %s3210_s3  ;;  %1656 = vmatpush.bf16.msra.mxu0 %v3695_v47  ;;  %v632_v9 = vpop.f32.mrf.mxu2  ;;  %v681_v52 = vpop.f32.mrf.mxu3  ;;  %v1070_v47 = vpack.c.b16 %v1061_v30, %v1060_v50 }
 0x1c3   :  { %v921_v49 = vpack.c.bf16 %v681_v52, %v632_v9 }
 0x1c4   :  { %1802 = vmatpush.bf16.msrb.mxu2 %v3831_v36 }
 0x1c5   :  { %v1122_v18 = vunpack.c.l.b16 %v921_v49  ;;  %v1178_v25 = vunpack.c.h.b16 %v921_v49  ;;  %v3910_v49 = vld [vmem:[%s4795_s5 + $0x80] sm:$0x11] }
 0x1c6   :  { %1657 = vmatpush.bf16.msra.mxu0 %v3707_v2  ;;  %v1572_v30 = vunpack.c.l.b16 %v3910_v49 }
 0x1c8   :  { %1803 = vmatpush.bf16.msrb.mxu2 %v3838_v15 }
 0x1ca   :  { %1092 = vrot.lane.b32.xlu0 %v1070_v47, %s3210_s3  ;;  %1658 = vmatpush.bf16.msra.mxu0 %v3655_v57  ;;  %v634_v20 = vpop.f32.mrf.mxu2  ;;  %v683_v41 = vpop.f32.mrf.mxu3 }
 0x1cb   :  { %v925_v8 = vpack.c.bf16 %v683_v41, %v634_v20 }
 0x1cd   :  { %v1123_v54 = vunpack.c.l.b16 %v925_v8  ;;  %v1179_v60 = vunpack.c.h.b16 %v925_v8  ;;  %v1604_v8 = vpack.c.b16 %v1572_v30, %v1572_v30 }
 0x1ce   :  { %1659 = vmatpush.bf16.msra.mxu0 %v3637_v31 }
 0x1cf   :  { %2833 = vmatmul.msk.bf16.gmra.mxu2 %vm495_vm0, %v3525_v63  ;;  %v3847_v2 = vpack.c.b16 %v1123_v54, %v1122_v18  ;;  %v3849_v37 = vpack.c.b16 %v1179_v60, %v1178_v25  ;;  %2841 = vmatmul.msk.bf16.gmra.mxu3 %vm495_vm0, %v3525_v63 }
 0x1d2   :  { %1688 = vmatpush.bf16.msrb.mxu0 %v3777_v46  ;;  %1086 = vrot.lane.b32.xlu0 %v3697_v48, %s3210_s3  ;;  %v637_v57 = vpop.f32.mrf.mxu2  ;;  %v686_v53 = vpop.f32.mrf.mxu3 }
 0x1d3   :  { %v3855_v58 = vpack.c.bf16 %v686_v53, %v637_v57 }
 0x1d5   :  { %v1124_v38 = vunpack.c.l.b16 %v3855_v58 }
 0x1d6   :  { %1689 = vmatpush.bf16.msrb.mxu0 %v1070_v47 }
 0x1da   :  { %1690 = vmatpush.bf16.msrb.mxu0 %v3753_v61  ;;  %1080 = vrot.lane.b32.xlu0 %v3639_v32, %s3210_s3  ;;  %v639_v31 = vpop.f32.mrf.mxu2  ;;  %v688_v46 = vpop.f32.mrf.mxu3 }
 0x1db   :  { %v3891_v34 = vpack.c.bf16 %v688_v46, %v639_v31 }
 0x1dd   :  { %v1125_v5 = vunpack.c.l.b16 %v3891_v34 }
 0x1de   :  { %1691 = vmatpush.bf16.msrb.mxu0 %v3798_v29 }
 0x1df   :  { %2834 = vmatmul.msk.bf16.gmra.mxu2 %vm495_vm0, %v3537_v10  ;;  %2842 = vmatmul.msk.bf16.gmra.mxu3 %vm495_vm0, %v3537_v10  ;;  %v3905_v52 = vpack.c.b16 %v1125_v5, %v1124_v38 }
 0x1e2   :  { %1692 = vmatpush.bf16.msrb.mxu0 %v3697_v48  ;;  %v642_v63 = vpop.f32.mrf.mxu2  ;;  %v691_v59 = vpop.f32.mrf.mxu3 }
 0x1e3   :  { %v3866_v11 = vpack.c.bf16 %v691_v59, %v642_v63 }
 0x1e6   :  { %1693 = vmatpush.bf16.msrb.mxu0 %v3775_v45 }
 0x1ea   :  { %1694 = vmatpush.bf16.msrb.mxu0 %v3653_v56  ;;  %v644_v61 = vpop.f32.mrf.mxu2  ;;  %v693_v1 = vpop.f32.mrf.mxu3 }
 0x1eb   :  { %v3925_v60 = vpack.c.bf16 %v693_v1, %v644_v61  ;;  %v1126_v61 = vunpack.c.l.b16 %v3866_v11 }
 0x1ed   :  { %v1127_v63 = vunpack.c.l.b16 %v3925_v60 }
 0x1ee   :  { %1695 = vmatpush.bf16.msrb.mxu0 %v3639_v32  ;;  %v2849_v32 = vld [vmem:[%s4795_s5] sm:$0xf] }
 0x1ef   :  { %2835 = vmatmul.msk.bf16.gmra.mxu2 %vm495_vm0, %v3561_v28  ;;  %2843 = vmatmul.msk.bf16.gmra.mxu3 %vm495_vm0, %v3561_v28  ;;  %v3126_v28 = vld [vmem:[%s4795_s5 + $0x3c] sm:$0xf0]  ;;  %v1139_v1 = vpack.c.b16 %v1127_v63, %v1126_v61  ;;  %v1180_v63 = vunpack.c.h.b16 %v3855_v58 }
 0x1f0   :  { %v2850_v17 = vor.u32 %v3126_v28, %v2849_v32 }
 0x1f2   :  { %v647_v48 = vpop.f32.mrf.mxu2  ;;  %v696_v10 = vpop.f32.mrf.mxu3  ;;  %1660 = vmatmul.bf16.vlgmr.msra.gmra.mxu0 %v2850_v17 }
 0x1f3   :  { %v3912_v26 = vpack.c.bf16 %v696_v10, %v647_v48 }
 0x1f5   :  { %v1184_v18 = vunpack.c.h.b16 %v3912_v26 }
 0x1fa   :  { %v649_v29 = vpop.f32.mrf.mxu2  ;;  %v698_v23 = vpop.f32.mrf.mxu3 }
 0x1fb   :  { %v3903_v9 = vpack.c.bf16 %v698_v23, %v649_v29  ;;  %v2857_v23 = vld [vmem:[%s4795_s5 + $0x8] sm:$0xf] }
 0x1fd   :  { %v1185_v20 = vunpack.c.h.b16 %v3903_v9 }
 0x1ff   :  { %2836 = vmatmul.msk.bf16.gmra.mxu2 %vm495_vm0, %v3573_v39  ;;  %2844 = vmatmul.msk.bf16.gmra.mxu3 %vm495_vm0, %v3573_v39  ;;  %v3929_v57 = vpack.c.b16 %v1185_v20, %v1184_v18  ;;  %v1128_v18 = vunpack.c.l.b16 %v3912_v26  ;;  %v1181_v26 = vunpack.c.h.b16 %v3891_v34 }
 0x201   :  { %v3978_v61 = vpack.c.b16 %v1181_v26, %v1180_v63 }
 0x202   :  { %v652_v56 = vpop.f32.mrf.mxu2  ;;  %v701_v45 = vpop.f32.mrf.mxu3  ;;  %1665 = vmatmul.bf16.gmra.mxu0 %v1604_v8 }
 0x203   :  { %v3879_v44 = vpack.c.bf16 %v701_v45, %v652_v56  ;;  %v1035_v48 = vpop.permute.xlu1 %1034  ;;  %v3127_v56 = vld [vmem:[%s4795_s5 + $0x44] sm:$0xf0] }
 0x204   :  { %v2858_v32 = vor.u32 %v3127_v56, %v2857_v23 }
 0x205   :  { %v1130_v39 = vunpack.c.l.b16 %v3879_v44  ;;  %v1186_v8 = vunpack.c.h.b16 %v3879_v44 }
 0x20a   :  { %v654_v40 = vpop.f32.mrf.mxu2  ;;  %v703_v22 = vpop.f32.mrf.mxu3 }
 0x20b   :  { %v3887_v24 = vpack.c.bf16 %v703_v22, %v654_v40  ;;  %v1033_v20 = vpop.permute.xlu1 %1032 }
 0x20d   :  { %v1131_v7 = vunpack.c.l.b16 %v3887_v24  ;;  %v1187_v30 = vunpack.c.h.b16 %v3887_v24 }
 0x20f   :  { %2837 = vmatmul.msk.bf16.gmra.mxu2 %vm495_vm0, %v3585_v51  ;;  %v3895_v19 = vpack.c.b16 %v1131_v7, %v1130_v39  ;;  %2845 = vmatmul.msk.bf16.gmra.mxu3 %vm495_vm0, %v3585_v51 }
 0x211   :  { %1162 = vrot.lane.b32.xlu0 %v3895_v19, %s3210_s3 }
 0x212   :  { %v657_v21 = vpop.f32.mrf.mxu2  ;;  %v706_v35 = vpop.f32.mrf.mxu3  ;;  %1696 = vmatmul.bf16.vlgmr.msrb.gmra.mxu0 %v2858_v32 }
 0x213   :  { %v3914_v51 = vpack.c.bf16 %v706_v35, %v657_v21  ;;  %v1031_v35 = vpop.permute.xlu2 %1030 }
 0x215   :  { %v1132_v25 = vunpack.c.l.b16 %v3914_v51 }
 0x219   :  { %1156 = vrot.lane.b32.xlu0 %v3905_v52, %s3210_s3 }
 0x21a   :  { %v659_v50 = vpop.f32.mrf.mxu2  ;;  %v708_v47 = vpop.f32.mrf.mxu3 }
 0x21b   :  { %v3920_v41 = vpack.c.bf16 %v708_v47, %v659_v50  ;;  %v1129_v47 = vunpack.c.l.b16 %v3903_v9 }
 0x21d   :  { %v1133_v54 = vunpack.c.l.b16 %v3920_v41 }
 0x21f   :  { %2838 = vmatmul.msk.bf16.gmra.mxu2 %vm495_vm0, %v3597_v0  ;;  %v1142_v53 = vpack.c.b16 %v1133_v54, %v1132_v25  ;;  %2846 = vmatmul.msk.bf16.gmra.mxu3 %vm495_vm0, %v3597_v0  ;;  %v3958_v25 = vpack.c.b16 %v1187_v30, %v1186_v8  ;;  %v1140_v54 = vpack.c.b16 %v1129_v47, %v1128_v18  ;;  %v3119_v18 = vld [vmem:[%s4795_s5 + $0xc] sm:$0xf] }
 0x221   :  { %1216 = vrot.lane.b32.xlu0 %v3929_v57, %s3210_s3  ;;  %1164 = vrot.lane.b32.xlu2 %v1142_v53, %s3210_s3 }
 0x222   :  { %v662_v31 = vpop.f32.mrf.mxu2  ;;  %v711_v46 = vpop.f32.mrf.mxu3 }
 0x223   :  { %v969_v10 = vpack.c.bf16 %v711_v46, %v662_v31  ;;  %v3963_v31 = vld [vmem:[%s4795_s5 + $0x88] sm:$0x11]  ;;  %v1029_v46 = vpop.permute.xlu2 %1028 }
 0x224   :  { %v1039_v59 = vpop.permute.xlu0 %1038  ;;  %v1574_v24 = vunpack.c.l.b16 %v3963_v31 }
 0x225   :  { %1670 = vmatpush.bf16.msra.mxu1 %v1039_v59  ;;  %v1134_v40 = vunpack.c.l.b16 %v969_v10  ;;  %v1190_v22 = vunpack.c.h.b16 %v969_v10  ;;  %v1189_v10 = vunpack.c.h.b16 %v3920_v41 }
 0x229   :  { %1158 = vrot.lane.b32.xlu2 %v1139_v1, %s3210_s3 }
 0x22a   :  { %v664_v29 = vpop.f32.mrf.mxu2  ;;  %v713_v0 = vpop.f32.mrf.mxu3 }
 0x22b   :  { %v973_v45 = vpack.c.bf16 %v713_v0, %v664_v29  ;;  %v1188_v29 = vunpack.c.h.b16 %v3914_v51  ;;  %v1183_v51 = vunpack.c.h.b16 %v3925_v60 }
 0x22c   :  { %v1037_v28 = vpop.permute.xlu0 %1036 }
 0x22d   :  { %v1135_v17 = vunpack.c.l.b16 %v973_v45  ;;  %v1191_v39 = vunpack.c.h.b16 %v973_v45  ;;  %1671 = vmatpush.bf16.msra.mxu1 %v1037_v28  ;;  %v1198_v23 = vpack.c.b16 %v1189_v10, %v1188_v29  ;;  %v3129_v10 = vld [vmem:[%s4795_s5 + $0x54] sm:$0xf0] }
 0x22f   :  { %v3945_v7 = vpack.c.b16 %v1191_v39, %v1190_v22  ;;  %v1143_v21 = vpack.c.b16 %v1135_v17, %v1134_v40 }
 0x231   :  { %1672 = vmatpush.bf16.msra.mxu1 %v1035_v48  ;;  %1152 = vrot.lane.b32.xlu2 %v3819_v42, %s3210_s3  ;;  %v1095_v48 = vpop.permute.xlu2 %1094 }
 0x232   :  { %1222 = vrot.lane.b32.xlu0 %v3945_v7, %s3210_s3  ;;  %1166 = vrot.lane.b32.xlu1 %v1143_v21, %s3210_s3  ;;  %v823_v5 = vpop.f32.mrf.mxu2  ;;  %v872_v38 = vpop.f32.mrf.mxu3 }
 0x233   :  { %1724 = vmatpush.bf16.msra.mxu0 %v1143_v21  ;;  %v3953_v50 = vpack.c.bf16 %v872_v38, %v823_v5 }
 0x234   :  { %v1027_v59 = vpop.permute.xlu0 %1026 }
 0x235   :  { %1673 = vmatpush.bf16.msra.mxu1 %v1033_v20 }
 0x237   :  { %1725 = vmatpush.bf16.msra.mxu0 %v1142_v53  ;;  %v1606_v53 = vpack.c.b16 %v1574_v24, %v1574_v24 }
 0x239   :  { %1674 = vmatpush.bf16.msra.mxu1 %v1031_v35  ;;  %1218 = vrot.lane.b32.xlu2 %v3958_v25, %s3210_s3 }
 0x23a   :  { %1294 = vrot.lane.b32.xlu0 %v3757_v33, %s3210_s3  ;;  %1160 = vrot.lane.b32.xlu1 %v1140_v54, %s3210_s3  ;;  %v3971_v44 = vpop.f32.mrf.mxu2  ;;  %v3973_v9 = vpop.f32.mrf.mxu3 }
 0x23b   :  { %1726 = vmatpush.bf16.msra.mxu0 %v3895_v19  ;;  %v1025_v19 = vpop.permute.xlu1 %1024 }
 0x23c   :  { %1701 = vmatmul.bf16.gmra.mxu0 %v1606_v53  ;;  %v1093_v0 = vpop.permute.xlu0 %1092 }
 0x23d   :  { %1675 = vmatpush.bf16.msra.mxu1 %v1029_v46 }
 0x23f   :  { %1727 = vmatpush.bf16.msra.mxu0 %v1140_v54  ;;  %v4813_v54 = vld [vmem:[#allocation5_spill] sm:$0xff] }
 0x241   :  { %1676 = vmatpush.bf16.msra.mxu1 %v1027_v59  ;;  %1212 = vrot.lane.b32.xlu2 %v3978_v61, %s3210_s3 }
 0x242   :  { %1208 = vrot.lane.b32.xlu0 %v3821_v55, %s3210_s3  ;;  %1154 = vrot.lane.b32.xlu1 %v3847_v2, %s3210_s3  ;;  %v828_v33 = vpop.f32.mrf.mxu2  ;;  %v877_v34 = vpop.f32.mrf.mxu3 }
 0x243   :  { %1728 = vmatpush.bf16.msra.mxu0 %v1139_v1  ;;  %v3986_v58 = vpack.c.bf16 %v877_v34, %v828_v33  ;;  %v1091_v41 = vpop.permute.xlu1 %1090 }
 0x245   :  { %1677 = vmatpush.bf16.msra.mxu1 %v1025_v19 }
 0x247   :  { %1729 = vmatpush.bf16.msra.mxu0 %v3905_v52  ;;  %v2865_v52 = vld [vmem:[%s4795_s5 + $0x10] sm:$0xf] }
 0x249   :  { %1706 = vmatpush.bf16.msrb.mxu1 %v1095_v48  ;;  %1292 = vrot.lane.b32.xlu2 %v3769_v3, %s3210_s3  ;;  %v3128_v3 = vld [vmem:[%s4795_s5 + $0x4c] sm:$0xf0]  ;;  %v2873_v48 = vld [vmem:[%s4795_s5 + $0x18] sm:$0xf] }
 0x24a   :  { %1288 = vrot.lane.b32.xlu0 %v3796_v12, %s3210_s3  ;;  %v3995_v1 = vpop.f32.mrf.mxu2  ;;  %v3997_v56 = vpop.f32.mrf.mxu3  ;;  %1220 = vrot.lane.b32.xlu1 %v1198_v23, %s3210_s3  ;;  %v1182_v12 = vunpack.c.h.b16 %v3866_v11  ;;  %v2866_v45 = vor.u32 %v3128_v3, %v2865_v52  ;;  %v1575_v3 = vunpack.c.h.b16 %v3963_v31 }
 0x24b   :  { %1730 = vmatpush.bf16.msra.mxu0 %v3847_v2  ;;  %v1089_v2 = vpop.permute.xlu2 %1088  ;;  %v1085_v40 = vpop.permute.xlu1 %1084 }
 0x24c   :  { %v1195_v32 = vpack.c.b16 %v1183_v51, %v1182_v12 }
 0x24d   :  { %1707 = vmatpush.bf16.msrb.mxu1 %v1093_v0  ;;  %v2874_v0 = vor.u32 %v3129_v10, %v2873_v48 }
 0x24f   :  { %1731 = vmatpush.bf16.msra.mxu0 %v3819_v42  ;;  %v1087_v42 = vpop.permute.xlu0 %1086 }
 0x251   :  { %1708 = vmatpush.bf16.msrb.mxu1 %v1091_v41  ;;  %1350 = vrot.lane.b32.xlu2 %v3759_v16, %s3210_s3  ;;  %v1607_v41 = vpack.c.b16 %v1575_v3, %v1575_v3 }
 0x252   :  { %1346 = vrot.lane.b32.xlu0 %v3725_v27, %s3210_s3  ;;  %v833_v28 = vpop.f32.mrf.mxu2  ;;  %1214 = vrot.lane.b32.xlu1 %v1195_v32, %s3210_s3  ;;  %v882_v60 = vpop.f32.mrf.mxu3 }
 0x253   :  { %1760 = vmatpush.bf16.msrb.mxu0 %v3945_v7  ;;  %v4016_v11 = vpack.c.bf16 %v882_v60, %v833_v28  ;;  %v1083_v39 = vpop.permute.xlu2 %1082 }
 0x254   :  { %1732 = vmatmul.bf16.vlgmr.msra.gmra.mxu0 %v2866_v45 }
 0x255   :  { %1709 = vmatpush.bf16.msrb.mxu1 %v1089_v2 }
 0x257   :  { %1761 = vmatpush.bf16.msrb.mxu0 %v1198_v23  ;;  %v1081_v7 = vpop.permute.xlu0 %1080 }
 0x259   :  { %1710 = vmatpush.bf16.msrb.mxu1 %v1087_v42  ;;  %1286 = vrot.lane.b32.xlu2 %v3807_v43, %s3210_s3 }
 0x25a   :  { %1282 = vrot.lane.b32.xlu0 %v3831_v36, %s3210_s3  ;;  %v4023_v22 = vpop.f32.mrf.mxu2  ;;  %1210 = vrot.lane.b32.xlu1 %v3849_v37, %s3210_s3  ;;  %v4027_v17 = vpop.f32.mrf.mxu3  ;;  %v3118_v36 = vld [vmem:[%s4795_s5 + $0x4] sm:$0xf] }
 0x25b   :  { %1762 = vmatpush.bf16.msrb.mxu0 %v3958_v25  ;;  %v2859_v25 = vld [vmem:[%s4795_s5 + $0x48] sm:$0xf0] }
 0x25c   :  { %v2862_v26 = vor.u32 %v3119_v18, %v2859_v25 }
 0x25d   :  { %1711 = vmatpush.bf16.msrb.mxu1 %v1085_v40 }
 0x25f   :  { %1763 = vmatpush.bf16.msrb.mxu0 %v3929_v57  ;;  %v2851_v57 = vld [vmem:[%s4795_s5 + $0x40] sm:$0xf0] }
 0x260   :  { %v2854_v35 = vor.u32 %v3118_v36, %v2851_v57 }
 0x261   :  { %1712 = vmatpush.bf16.msrb.mxu1 %v1083_v39  ;;  %1344 = vrot.lane.b32.xlu2 %v3713_v6, %s3210_s3 }
 0x262   :  { %1340 = vrot.lane.b32.xlu0 %v3661_v4, %s3210_s3  ;;  %v838_v43 = vpop.f32.mrf.mxu2  ;;  %1290 = vrot.lane.b32.xlu1 %v3789_v14, %s3210_s3  ;;  %v887_v21 = vpop.f32.mrf.mxu3  ;;  %v4811_v14 = vld [vmem:[#allocation6_spill] sm:$0xff] }
 0x263   :  { %1764 = vmatpush.bf16.msrb.mxu0 %v1195_v32  ;;  %v4042_v5 = vpack.c.bf16 %v887_v21, %v838_v43  ;;  %1678 = vmatmul.bf16.vlgmr.msra.gmra.mxu1 %v2854_v35  ;;  %v4121_v43 = vpack.c.bf16 %v4027_v17, %v4023_v22 }
 0x265   :  { %1713 = vmatpush.bf16.msrb.mxu1 %v1081_v7  ;;  %v1381_v35 = vunpack.c.l.b16 %v4121_v43 }
 0x267   :  { %1765 = vmatpush.bf16.msrb.mxu0 %v3978_v61 }
 0x269   :  { %1280 = vrot.lane.b32.xlu2 %v3838_v15, %s3210_s3 }
 0x26a   :  { %v4048_v38 = vpop.f32.mrf.mxu2  ;;  %1348 = vrot.lane.b32.xlu1 %v3745_v13, %s3210_s3  ;;  %v4052_v30 = vpop.f32.mrf.mxu3 }
 0x26b   :  { %1766 = vmatpush.bf16.msrb.mxu0 %v3849_v37  ;;  %v1573_v37 = vunpack.c.h.b16 %v3910_v49  ;;  %v943_v22 = vpack.c.bf16 %v4052_v30, %v4048_v38  ;;  %v4140_v30 = vpack.c.bf16 %v3997_v56, %v3995_v1  ;;  %v4153_v56 = vld [vmem:[%s4795_s5 + $0x98] sm:$0x11] }
 0x26c   :  { %v1578_v3 = vunpack.c.l.b16 %v4153_v56 }
 0x26d   :  { %v1605_v20 = vpack.c.b16 %v1573_v37, %v1573_v37  ;;  %v1439_v18 = vunpack.c.h.b16 %v943_v22 }
 0x26f   :  { %1767 = vmatpush.bf16.msrb.mxu0 %v3821_v55 }
 0x271   :  { %1338 = vrot.lane.b32.xlu2 %v4811_v14, %s3210_s3 }
 0x272   :  { %v4060_v47 = vpop.f32.mrf.mxu2  ;;  %1284 = vrot.lane.b32.xlu1 %v3813_v62, %s3210_s3  ;;  %v4064_v15 = vpop.f32.mrf.mxu3  ;;  %v4078_v62 = vld [vmem:[%s4795_s5 + $0x90] sm:$0x11] }
 0x273   :  { %1832 = vmatpush.bf16.msra.mxu0 %v3759_v16  ;;  %1683 = vmatmul.bf16.gmra.mxu1 %v1605_v20  ;;  %v1380_v20 = vunpack.c.l.b16 %v4016_v11  ;;  %v947_v1 = vpack.c.bf16 %v4064_v15, %v4060_v47  ;;  %v1382_v47 = vunpack.c.l.b16 %v4042_v5 }
 0x275   :  { %v4133_v17 = vpack.c.b16 %v1381_v35, %v1380_v20 }
 0x277   :  { %1833 = vmatpush.bf16.msra.mxu0 %v3745_v13  ;;  %v4812_v13 = vld [vmem:[#allocation7_spill] sm:$0xff] }
 0x27a   :  { %v4068_v16 = vpop.f32.mrf.mxu2  ;;  %1342 = vrot.lane.b32.xlu1 %v4812_v13, %s3210_s3  ;;  %v4072_v55 = vpop.f32.mrf.mxu3 }
 0x27b   :  { %1834 = vmatpush.bf16.msra.mxu0 %v3725_v27  ;;  %v1165_v49 = vpop.permute.xlu2 %1164  ;;  %v1576_v27 = vunpack.c.l.b16 %v4078_v62 }
 0x27f   :  { %1835 = vmatpush.bf16.msra.mxu0 %v3713_v6  ;;  %v1608_v6 = vpack.c.b16 %v1576_v27, %v1576_v27 }
 0x281   :  { %1737 = vmatmul.bf16.gmra.mxu0 %v1608_v6 }
 0x282   :  { %v848_v8 = vpop.f32.mrf.mxu2  ;;  %1336 = vrot.lane.b32.xlu1 %v4813_v54, %s3210_s3  ;;  %v897_v24 = vpop.f32.mrf.mxu3 }
 0x283   :  { %1836 = vmatpush.bf16.msra.mxu0 %v4812_v13  ;;  %1714 = vmatmul.bf16.vlgmr.msrb.gmra.mxu1 %v2862_v26  ;;  %v4091_v53 = vpop.permute.xlu2 %1158  ;;  %v4094_v46 = vpack.c.bf16 %v897_v24, %v848_v8  ;;  %v1438_v24 = vunpack.c.h.b16 %v4042_v5 }
 0x285   :  { %v1386_v33 = vunpack.c.l.b16 %v4094_v46  ;;  %v1442_v15 = vunpack.c.h.b16 %v4094_v46  ;;  %v3120_v46 = vld [vmem:[%s4795_s5 + $0x14] sm:$0xf] }
 0x287   :  { %1837 = vmatpush.bf16.msra.mxu0 %v3661_v4  ;;  %v1163_v4 = vpop.permute.xlu0 %1162 }
 0x28a   :  { %v850_v63 = vpop.f32.mrf.mxu2  ;;  %v899_v59 = vpop.f32.mrf.mxu3 }
 0x28b   :  { %1838 = vmatpush.bf16.msra.mxu0 %v4811_v14  ;;  %v4096_v61 = vpack.c.bf16 %v899_v59, %v850_v63  ;;  %v4110_v23 = vpop.permute.xlu2 %1152 }
 0x28d   :  { %v1387_v34 = vunpack.c.l.b16 %v4096_v61 }
 0x28f   :  { %1839 = vmatpush.bf16.msra.mxu0 %v4813_v54  ;;  %v4100_v19 = vpack.c.b16 %v1387_v34, %v1386_v33  ;;  %v4108_v29 = vpop.permute.xlu0 %1156  ;;  %v1451_v34 = vpack.c.b16 %v1439_v18, %v1438_v24  ;;  %v1432_v18 = vunpack.c.h.b16 %v3953_v50 }
 0x291   :  { %1418 = vrot.lane.b32.xlu2 %v4100_v19, %s3210_s3  ;;  %1768 = vmatmul.bf16.vlgmr.msrb.gmra.mxu0 %v2874_v0  ;;  %v951_v0 = vpack.c.bf16 %v4072_v55, %v4068_v16  ;;  %v1383_v16 = vunpack.c.l.b16 %v943_v22  ;;  %v1443_v55 = vunpack.c.h.b16 %v4096_v61 }
 0x292   :  { %v853_v52 = vpop.f32.mrf.mxu2  ;;  %v902_v51 = vpop.f32.mrf.mxu3 }
 0x293   :  { %1719 = vmatmul.bf16.gmra.mxu1 %v1607_v41  ;;  %v963_v12 = vpack.c.bf16 %v902_v51, %v853_v52  ;;  %v4117_v28 = vpop.permute.xlu2 %1218  ;;  %v1434_v51 = vunpack.c.h.b16 %v3986_v58  ;;  %v1385_v41 = vunpack.c.l.b16 %v951_v0  ;;  %v1453_v61 = vpack.c.b16 %v1443_v55, %v1442_v15 }
 0x295   :  { %v1388_v42 = vunpack.c.l.b16 %v963_v12  ;;  %v1444_v40 = vunpack.c.h.b16 %v963_v12  ;;  %v1610_v12 = vpack.c.b16 %v1578_v3, %v1578_v3 }
 0x297   :  { %v4115_v32 = vpop.permute.xlu0 %1216 }
 0x29a   :  { %v855_v45 = vpop.f32.mrf.mxu2  ;;  %v904_v2 = vpop.f32.mrf.mxu3 }
 0x29b   :  { %v967_v60 = vpack.c.bf16 %v904_v2, %v855_v45  ;;  %v4129_v13 = vpop.permute.xlu2 %1212  ;;  %v1384_v45 = vunpack.c.l.b16 %v947_v1 }
 0x29d   :  { %v1389_v39 = vunpack.c.l.b16 %v967_v60  ;;  %v1445_v7 = vunpack.c.h.b16 %v967_v60  ;;  %v1441_v60 = vunpack.c.h.b16 %v951_v0 }
 0x29f   :  { %v1454_v31 = vpack.c.b16 %v1445_v7, %v1444_v40  ;;  %v1398_v36 = vpack.c.b16 %v1389_v39, %v1388_v42  ;;  %v1395_v42 = vpack.c.b16 %v1383_v16, %v1382_v47  ;;  %v1396_v40 = vpack.c.b16 %v1385_v41, %v1384_v45  ;;  %v2881_v7 = vld [vmem:[%s4795_s5 + $0x20] sm:$0xf]  ;;  %v3132_v16 = vld [vmem:[%s4795_s5 + $0x6c] sm:$0xf0]  ;;  %v1509_v45 = vld [vmem:[%s4795_s5 + $0xa8] sm:$0x11] }
 0x2a0   :  { %v1440_v39 = vunpack.c.h.b16 %v947_v1  ;;  %v2897_v1 = vld [vmem:[%s4795_s5 + $0x30] sm:$0xf] }
 0x2a1   :  { %1476 = vrot.lane.b32.xlu2 %v1454_v31, %s3210_s3  ;;  %1420 = vrot.lane.b32.xlu0 %v1398_v36, %s3210_s3 }
 0x2a2   :  { %v858_v57 = vpop.f32.mrf.mxu2  ;;  %v907_v21 = vpop.f32.mrf.mxu3  ;;  %1773 = vmatmul.bf16.gmra.mxu0 %v1610_v12 }
 0x2a3   :  { %v971_v27 = vpack.c.bf16 %v907_v21, %v858_v57  ;;  %v1437_v21 = vunpack.c.h.b16 %v4121_v43  ;;  %v1378_v43 = vunpack.c.l.b16 %v3986_v58 }
 0x2a4   :  { %v4126_v14 = vpop.permute.xlu0 %1222  ;;  %v1167_v37 = vpop.permute.xlu1 %1166 }
 0x2a5   :  { %1742 = vmatpush.bf16.msra.mxu1 %v1167_v37  ;;  %v1390_v63 = vunpack.c.l.b16 %v971_v27  ;;  %v1446_v59 = vunpack.c.h.b16 %v971_v27  ;;  %v1436_v37 = vunpack.c.h.b16 %v4016_v11 }
 0x2a9   :  { %1743 = vmatpush.bf16.msra.mxu1 %v1165_v49  ;;  %1412 = vrot.lane.b32.xlu2 %v4133_v17, %s3210_s3  ;;  %v1293_v49 = vpop.permute.xlu2 %1292 }
 0x2aa   :  { %v860_v6 = vpop.f32.mrf.mxu2  ;;  %v909_v8 = vpop.f32.mrf.mxu3 }
 0x2ab   :  { %v975_v25 = vpack.c.bf16 %v909_v8, %v860_v6 }
 0x2ac   :  { %v1295_v54 = vpop.permute.xlu0 %1294  ;;  %v1161_v26 = vpop.permute.xlu1 %1160 }
 0x2ad   :  { %1814 = vmatpush.bf16.msrb.mxu3 %v1295_v54  ;;  %v1391_v33 = vunpack.c.l.b16 %v975_v25  ;;  %v1447_v38 = vunpack.c.h.b16 %v975_v25  ;;  %1744 = vmatpush.bf16.msra.mxu1 %v1163_v4  ;;  %v1435_v4 = vunpack.c.h.b16 %v4140_v30  ;;  %v1577_v25 = vunpack.c.h.b16 %v4078_v62  ;;  %v4202_v54 = vld [vmem:[%s4795_s5 + $0xa0] sm:$0x11] }
 0x2af   :  { %v1455_v48 = vpack.c.b16 %v1447_v38, %v1446_v59  ;;  %v1399_v10 = vpack.c.b16 %v1391_v33, %v1390_v63  ;;  %v1449_v2 = vpack.c.b16 %v1435_v4, %v1434_v51  ;;  %v3131_v33 = vld [vmem:[%s4795_s5 + $0x64] sm:$0xf0] }
 0x2b1   :  { %1815 = vmatpush.bf16.msrb.mxu3 %v1293_v49  ;;  %1745 = vmatpush.bf16.msra.mxu1 %v1161_v26  ;;  %v1351_v24 = vpop.permute.xlu2 %1350 }
 0x2b2   :  { %1470 = vrot.lane.b32.xlu2 %v1451_v34, %s3210_s3  ;;  %1478 = vrot.lane.b32.xlu0 %v1455_v48, %s3210_s3 }
 0x2b3   :  { %1904 = vmatpush.bf16.msrb.mxu0 %v1455_v48  ;;  %1422 = vrot.lane.b32.xlu1 %v1399_v10, %s3210_s3  ;;  %v3121_v48 = vld [vmem:[%s4795_s5 + $0x1c] sm:$0xf] }
 0x2b4   :  { %1868 = vmatpush.bf16.msra.mxu2 %v1399_v10  ;;  %v1155_v52 = vpop.permute.xlu1 %1154  ;;  %v1209_v8 = vpop.permute.xlu0 %1208  ;;  %v2875_v10 = vld [vmem:[%s4795_s5 + $0x58] sm:$0xf0] }
 0x2b5   :  { %1746 = vmatpush.bf16.msra.mxu1 %v4091_v53  ;;  %v1452_v53 = vpack.c.b16 %v1441_v60, %v1440_v39  ;;  %v2878_v55 = vor.u32 %v3121_v48, %v2875_v10 }
 0x2b7   :  { %1905 = vmatpush.bf16.msrb.mxu0 %v1454_v31  ;;  %v4178_v31 = vpop.f32.mrf.mxu0 }
 0x2b8   :  { %1869 = vmatpush.bf16.msra.mxu2 %v1398_v36  ;;  %v919_v36 = vpack.c.bf16 %v3973_v9, %v3971_v44  ;;  %v1379_v44 = vunpack.c.l.b16 %v4140_v30  ;;  %v1450_v9 = vpack.c.b16 %v1437_v21, %v1436_v37 }
 0x2b9   :  { %1747 = vmatpush.bf16.msra.mxu1 %v4108_v29  ;;  %v2867_v29 = vld [vmem:[%s4795_s5 + $0x50] sm:$0xf0]  ;;  %v1287_v38 = vpop.permute.xlu2 %1286 }
 0x2ba   :  { %1466 = vrot.lane.b32.xlu2 %v1449_v2, %s3210_s3  ;;  %1414 = vrot.lane.b32.xlu0 %v1395_v42, %s3210_s3  ;;  %v2870_v57 = vor.u32 %v3120_v46, %v2867_v29  ;;  %v1377_v20 = vunpack.c.l.b16 %v919_v36  ;;  %v1393_v27 = vpack.c.b16 %v1379_v44, %v1378_v43 }
 0x2bb   :  { %1906 = vmatpush.bf16.msrb.mxu0 %v1453_v61  ;;  %1416 = vrot.lane.b32.xlu1 %v1396_v40, %s3210_s3 }
 0x2bc   :  { %1870 = vmatpush.bf16.msra.mxu2 %v4100_v19  ;;  %v1221_v5 = vpop.permute.xlu1 %1220  ;;  %v3130_v19 = vld [vmem:[%s4795_s5 + $0x5c] sm:$0xf0]  ;;  %v1289_v62 = vpop.permute.xlu0 %1288 }
 0x2bd   :  { %1748 = vmatpush.bf16.msra.mxu1 %v1155_v52  ;;  %v2882_v35 = vor.u32 %v3130_v19, %v2881_v7  ;;  %v2898_v52 = vor.u32 %v3132_v16, %v2897_v1  ;;  %v1579_v7 = vunpack.c.h.b16 %v4153_v56  ;;  %v1581_v56 = vunpack.c.h.b16 %v4202_v54 }
 0x2bf   :  { %1907 = vmatpush.bf16.msrb.mxu0 %v1452_v53  ;;  %1804 = vmatmul.bf16.vlgmr.msrb.gmra.mxu2 %v2882_v35  ;;  %v4192_v6 = vpop.f32.mrf.mxu0 }
 0x2c0   :  { %1871 = vmatpush.bf16.msra.mxu2 %v1396_v40  ;;  %v2883_v40 = vld [vmem:[%s4795_s5 + $0x60] sm:$0xf0] }
 0x2c1   :  { %1749 = vmatpush.bf16.msra.mxu1 %v4110_v23  ;;  %v1376_v23 = vunpack.c.l.b16 %v3953_v50  ;;  %v1609_v50 = vpack.c.b16 %v1577_v25, %v1577_v25  ;;  %v1345_v41 = vpop.permute.xlu2 %1344 }
 0x2c2   :  { %1472 = vrot.lane.b32.xlu0 %v1452_v53, %s3210_s3  ;;  %v4250_v53 = vld [vmem:[%s4795_s5 + $0xb0] sm:$0x11] }
 0x2c3   :  { %1908 = vmatpush.bf16.msrb.mxu0 %v1451_v34  ;;  %1474 = vrot.lane.b32.xlu1 %v1453_v61, %s3210_s3  ;;  %v1392_v11 = vpack.c.b16 %v1377_v20, %v1376_v23  ;;  %v4218_v34 = vld [vmem:[%s4794_s4] ss:$0 sm:$0xff]  ;;  %v3122_v61 = vld [vmem:[%s4795_s5 + $0x24] sm:$0xf]  ;;  %v1584_v19 = vunpack.c.l.b16 %v4250_v53 }
 0x2c4   :  { %1872 = vmatpush.bf16.msra.mxu2 %v1395_v42  ;;  %1750 = vmatmul.bf16.vlgmr.msra.gmra.mxu1 %v2870_v57  ;;  %v1215_v22 = vpop.permute.xlu1 %1214  ;;  %v1347_v0 = vpop.permute.xlu0 %1346  ;;  %v1662_v4 = vadd.f32 %v4218_v34, %v4178_v31  ;;  %v2886_v29 = vor.u32 %v3122_v61, %v2883_v40  ;;  %v1611_v57 = vpack.c.b16 %v1579_v7, %v1579_v7 }
 0x2c5   :  { %1778 = vmatpush.bf16.msrb.mxu1 %v4126_v14  ;;  %v1433_v14 = vunpack.c.h.b16 %v919_v36  ;;  %v1616_v21 = vpack.c.b16 %v1584_v19, %v1584_v19 }
 0x2c7   :  { %1909 = vmatpush.bf16.msrb.mxu0 %v1450_v9  ;;  %v1666_v63 = vpop.f32.mrf.mxu0 }
 0x2c8   :  { %1873 = vmatpush.bf16.msra.mxu2 %v4133_v17  ;;  %v1448_v17 = vpack.c.b16 %v1433_v14, %v1432_v18  ;;  %v1667_v36 = vadd.f32 %v4218_v34, %v1666_v63  ;;  %v3123_v14 = vld [vmem:[%s4795_s5 + $0x2c] sm:$0xf] }
 0x2c9   :  { %1779 = vmatpush.bf16.msrb.mxu1 %v1221_v5  ;;  %v1281_v46 = vpop.permute.xlu2 %1280 }
 0x2ca   :  { %1408 = vrot.lane.b32.xlu0 %v1392_v11, %s3210_s3 }
 0x2cb   :  { %1910 = vmatpush.bf16.msrb.mxu0 %v1449_v2  ;;  %1410 = vrot.lane.b32.xlu1 %v1393_v27, %s3210_s3  ;;  %v1582_v2 = vunpack.c.l.b16 %v1509_v45 }
 0x2cc   :  { %1874 = vmatpush.bf16.msra.mxu2 %v1393_v27  ;;  %v1211_v58 = vpop.permute.xlu1 %1210  ;;  %v1283_v42 = vpop.permute.xlu0 %1282  ;;  %v2891_v27 = vld [vmem:[%s4795_s5 + $0x68] sm:$0xf0] }
 0x2cd   :  { %1780 = vmatpush.bf16.msrb.mxu1 %v4117_v28  ;;  %v1580_v28 = vunpack.c.l.b16 %v4202_v54  ;;  %v1614_v60 = vpack.c.b16 %v1582_v2, %v1582_v2 }
 0x2cf   :  { %1911 = vmatpush.bf16.msrb.mxu0 %v1448_v17  ;;  %v1612_v26 = vpack.c.b16 %v1580_v28, %v1580_v28  ;;  %v1668_v49 = vpop.f32.mrf.mxu0  ;;  %v1583_v28 = vunpack.c.h.b16 %v1509_v45  ;;  %v1511_v45 = vld [vmem:[%s4795_s5 + $0xb8] sm:$0x11] }
 0x2d0   :  { %1875 = vmatpush.bf16.msra.mxu2 %v1392_v11  ;;  %v1613_v11 = vpack.c.b16 %v1581_v56, %v1581_v56  ;;  %v1586_v2 = vunpack.c.l.b16 %v1511_v45  ;;  %v2907_v56 = vld [vmem:[%s4795_s5 + $0x78] sm:$0xf0] }
 0x2d1   :  { %1781 = vmatpush.bf16.msrb.mxu1 %v4115_v32  ;;  %1809 = vmatmul.bf16.gmra.mxu2 %v1612_v26  ;;  %v2889_v32 = vld [vmem:[%s4795_s5 + $0x28] sm:$0xf]  ;;  %v1339_v44 = vpop.permute.xlu2 %1338  ;;  %v1615_v26 = vpack.c.b16 %v1583_v28, %v1583_v28 }
 0x2d2   :  { %1464 = vrot.lane.b32.xlu0 %v1448_v17, %s3210_s3  ;;  %v2890_v30 = vor.u32 %v3131_v33, %v2889_v32  ;;  %v1618_v61 = vpack.c.b16 %v1586_v2, %v1586_v2 }
 0x2d3   :  { %1468 = vrot.lane.b32.xlu1 %v1450_v9, %s3210_s3 }
 0x2d4   :  { %1755 = vmatmul.bf16.gmra.mxu1 %v1609_v50  ;;  %v1291_v59 = vpop.permute.xlu1 %1290  ;;  %1840 = vmatmul.bf16.vlgmr.msra.gmra.mxu0 %v2890_v30  ;;  %v1341_v20 = vpop.permute.xlu0 %1340 }
 0x2d5   :  { %1782 = vmatpush.bf16.msrb.mxu1 %v1215_v22  ;;  %1816 = vmatpush.bf16.msrb.mxu3 %v1291_v59 }
 0x2d7   :  { %v1697_v51 = vpop.f32.mrf.mxu0 }
 0x2d9   :  { %1783 = vmatpush.bf16.msrb.mxu1 %v4129_v13  ;;  %1817 = vmatpush.bf16.msrb.mxu3 %v1289_v62 }
 0x2dc   :  { %v1349_v13 = vpop.permute.xlu1 %1348 }
 0x2dd   :  { %1784 = vmatpush.bf16.msrb.mxu1 %v1211_v58  ;;  %1818 = vmatpush.bf16.msrb.mxu3 %v1287_v38 }
 0x2df   :  { %v4245_v5 = vpop.f32.mrf.mxu0 }
 0x2e0   :  { %v1679_v3 = vpop.f32.mrf.mxu1 }
 0x2e1   :  { %1785 = vmatpush.bf16.msrb.mxu1 %v1209_v8  ;;  %v1680_v47 = vadd.f32 %v1679_v3, %v1662_v4  ;;  %1876 = vmatmul.bf16.vlgmr.msra.gmra.mxu2 %v2898_v52  ;;  %v2894_v8 = vor.u32 %v3123_v14, %v2891_v27  ;;  %v3133_v4 = vld [vmem:[%s4795_s5 + $0x74] sm:$0xf0] }
 0x2e3   :  { %v1698_v12 = vadd.f32 %v1697_v51, %v1680_v47 }
 0x2e4   :  { %1786 = vmatmul.bf16.vlgmr.msrb.gmra.mxu1 %v2878_v55  ;;  %v1285_v15 = vpop.permute.xlu1 %1284  ;;  %1845 = vmatmul.bf16.gmra.mxu0 %v1614_v60 }
 0x2e5   :  { %1850 = vmatpush.bf16.msra.mxu1 %v1351_v24  ;;  %1819 = vmatpush.bf16.msrb.mxu3 %v1285_v15 }
 0x2e7   :  { %v1702_v37 = vpop.f32.mrf.mxu0 }
 0x2e8   :  { %v4243_v39 = vpop.f32.mrf.mxu1 }
 0x2e9   :  { %1851 = vmatpush.bf16.msra.mxu1 %v1349_v13  ;;  %1820 = vmatpush.bf16.msrb.mxu3 %v1283_v42 }
 0x2eb   :  { %v1419_v49 = vpop.permute.xlu2 %1418 }
 0x2ec   :  { %v1343_v31 = vpop.permute.xlu1 %1342 }
 0x2ed   :  { %1852 = vmatpush.bf16.msra.mxu1 %v1347_v0  ;;  %1821 = vmatpush.bf16.msrb.mxu3 %v1281_v46  ;;  %v2905_v0 = vld [vmem:[%s4795_s5 + $0x38] sm:$0xf] }
 0x2ee   :  { %v2906_v1 = vor.u32 %v3133_v4, %v2905_v0 }
 0x2ef   :  { %v1704_v23 = vpop.f32.mrf.mxu0 }
 0x2f0   :  { %1822 = vmatmul.bf16.vlgmr.msrb.gmra.mxu3 %v2886_v29  ;;  %v1684_v35 = vpop.f32.mrf.mxu1  ;;  %v3124_v29 = vld [vmem:[%s4795_s5 + $0x34] sm:$0xf] }
 0x2f1   :  { %1853 = vmatpush.bf16.msra.mxu1 %v1345_v41  ;;  %v1685_v22 = vadd.f32 %v1684_v35, %v1667_v36  ;;  %1881 = vmatmul.bf16.gmra.mxu2 %v1616_v21 }
 0x2f3   :  { %v1703_v50 = vadd.f32 %v1702_v37, %v1685_v22 }
 0x2f4   :  { %1791 = vmatmul.bf16.gmra.mxu1 %v1611_v57  ;;  %v1337_v43 = vpop.permute.xlu1 %1336  ;;  %1912 = vmatmul.bf16.vlgmr.msrb.gmra.mxu0 %v2906_v1 }
 0x2f5   :  { %1854 = vmatpush.bf16.msra.mxu1 %v1343_v31 }
 0x2f7   :  { %v1733_v58 = vpop.f32.mrf.mxu0 }
 0x2f8   :  { %v1686_v9 = vpop.f32.mrf.mxu1 }
 0x2f9   :  { %1855 = vmatpush.bf16.msra.mxu1 %v1341_v20 }
 0x2fb   :  { %v1477_v16 = vpop.permute.xlu2 %1476 }
 0x2fd   :  { %1856 = vmatpush.bf16.msra.mxu1 %v1339_v44 }
 0x2ff   :  { %v1735_v24 = vpop.f32.mrf.mxu0 }
 0x300   :  { %1827 = vmatmul.bf16.gmra.mxu3 %v1613_v11  ;;  %v1715_v18 = vpop.f32.mrf.mxu1  ;;  %v1585_v11 = vunpack.c.h.b16 %v4250_v53 }
 0x301   :  { %1857 = vmatpush.bf16.msra.mxu1 %v1337_v43  ;;  %v1716_v25 = vadd.f32 %v1715_v18, %v1698_v12  ;;  %v1664_v12 = vadd.f32 %v4218_v34, %v4192_v6  ;;  %v2899_v6 = vld [vmem:[%s4795_s5 + $0x70] sm:$0xf0] }
 0x303   :  { %v1734_v17 = vadd.f32 %v1733_v58, %v1716_v25  ;;  %v1413_v51 = vpop.permute.xlu2 %1412  ;;  %v1682_v60 = vadd.f32 %v4243_v39, %v1664_v12  ;;  %v2902_v39 = vor.u32 %v3124_v29, %v2899_v6 }
 0x304   :  { %1858 = vmatmul.bf16.vlgmr.msra.gmra.mxu1 %v2894_v8  ;;  %1917 = vmatmul.bf16.gmra.mxu0 %v1618_v61  ;;  %v1617_v8 = vpack.c.b16 %v1585_v11, %v1585_v11  ;;  %v3144_v11 = vld [vmem:[%s4796_s6 + $0x54] sm:$0xf] }
 0x305   :  { %v1700_v34 = vadd.f32 %v4245_v5, %v1682_v60  ;;  %v3125_v5 = vld [vmem:[%s4795_s5 + $0x3c] sm:$0xf] }
 0x306   :  { %v2910_v43 = vor.u32 %v3125_v5, %v2907_v56  ;;  %v2983_v5 = vld [vmem:[%s4796_s6 + $0x94] sm:$0xf0] }
 0x307   :  { %v1738_v62 = vpop.f32.mrf.mxu0 }
 0x308   :  { %v1717_v54 = vpop.f32.mrf.mxu1 }
 0x309   :  { %v1718_v36 = vadd.f32 %v1717_v54, %v1700_v34 }
 0x30b   :  { %v1736_v35 = vadd.f32 %v1735_v24, %v1718_v36  ;;  %v1587_v24 = vunpack.c.h.b16 %v1511_v45  ;;  %v3151_v36 = vld [vmem:[%s4796_s6 + $0x88] sm:$0xf0] }
 0x30c   :  { %v1471_v42 = vpop.permute.xlu2 %1470 }
 0x30d   :  { %v1619_v28 = vpack.c.b16 %v1587_v24, %v1587_v24 }
 0x30f   :  { %v1740_v38 = vpop.f32.mrf.mxu0 }
 0x310   :  { %v1720_v63 = vpop.f32.mrf.mxu1 }
 0x311   :  { %v1721_v59 = vadd.f32 %v1720_v63, %v1703_v50 }
 0x313   :  { %v4262_v32 = vadd.f32 %v1738_v62, %v1721_v59  ;;  %v1421_v30 = vpop.permute.xlu0 %1420 }
 0x314   :  { %1863 = vmatmul.bf16.gmra.mxu1 %v1615_v26  ;;  %v1467_v20 = vpop.permute.xlu2 %1466 }
 0x317   :  { %v1769_v13 = vpop.f32.mrf.mxu0 }
 0x318   :  { %v1722_v33 = vpop.f32.mrf.mxu1 }
 0x31f   :  { %v1771_v55 = vpop.f32.mrf.mxu0 }
 0x324   :  { %v1479_v48 = vpop.permute.xlu0 %1478 }
 0x325   :  { %v1423_v10 = vpop.permute.xlu1 %1422  ;;  %1922 = vmatpush.bf16.msrb.mxu1 %v1479_v48 }
 0x326   :  { %1886 = vmatpush.bf16.msra.mxu3 %v1423_v10 }
 0x327   :  { %v1774_v47 = vpop.f32.mrf.mxu0 }
 0x329   :  { %1923 = vmatpush.bf16.msrb.mxu1 %v1477_v16 }
 0x32a   :  { %1887 = vmatpush.bf16.msra.mxu3 %v1421_v30 }
 0x32c   :  { %v1415_v52 = vpop.permute.xlu0 %1414 }
 0x32d   :  { %v1417_v3 = vpop.permute.xlu1 %1416 }
 0x32e   :  { %1888 = vmatpush.bf16.msra.mxu3 %v1419_v49 }
 0x32f   :  { %v1776_v46 = vpop.f32.mrf.mxu0 }
 0x332   :  { %1889 = vmatpush.bf16.msra.mxu3 %v1417_v3 }
 0x334   :  { %v1473_v15 = vpop.permute.xlu0 %1472 }
 0x335   :  { %v1475_v41 = vpop.permute.xlu1 %1474 }
 0x336   :  { %1890 = vmatpush.bf16.msra.mxu3 %v1415_v52  ;;  %1924 = vmatpush.bf16.msrb.mxu1 %v1475_v41 }
 0x33a   :  { %1891 = vmatpush.bf16.msra.mxu3 %v1413_v51  ;;  %1925 = vmatpush.bf16.msrb.mxu1 %v1473_v15 }
 0x33c   :  { %v1409_v7 = vpop.permute.xlu0 %1408 }
 0x33d   :  { %v1411_v40 = vpop.permute.xlu1 %1410 }
 0x33e   :  { %1892 = vmatpush.bf16.msra.mxu3 %v1411_v40  ;;  %1926 = vmatpush.bf16.msrb.mxu1 %v1471_v42 }
 0x341   :  { %v1751_v19 = vpop.f32.mrf.mxu1 }
 0x342   :  { %v1752_v31 = vadd.f32 %v1751_v19, %v1734_v17  ;;  %1893 = vmatpush.bf16.msra.mxu3 %v1409_v7  ;;  %v1805_v37 = vpop.f32.mrf.mxu2 }
 0x344   :  { %v1770_v57 = vadd.f32 %v1769_v13, %v1752_v31  ;;  %v1465_v23 = vpop.permute.xlu0 %1464  ;;  %v2973_v31 = vld [vmem:[%s4796_s6 + $0x78] sm:$0xf] }
 0x345   :  { %1894 = vmatmul.bf16.vlgmr.msra.gmra.mxu3 %v2902_v39  ;;  %v1469_v21 = vpop.permute.xlu1 %1468 }
 0x346   :  { %1927 = vmatpush.bf16.msrb.mxu1 %v1469_v21  ;;  %v3149_v21 = vld [vmem:[%s4796_s6 + $0x7c] sm:$0xf] }
 0x349   :  { %v1753_v22 = vpop.f32.mrf.mxu1 }
 0x34a   :  { %v1754_v44 = vadd.f32 %v1753_v22, %v1736_v35  ;;  %1928 = vmatpush.bf16.msrb.mxu1 %v1467_v20  ;;  %v1807_v14 = vpop.f32.mrf.mxu2  ;;  %v2975_v35 = vld [vmem:[%s4796_s6 + $0x8c] sm:$0xf0]  ;;  %v3152_v22 = vld [vmem:[%s4796_s6 + $0x90] sm:$0xf0] }
 0x34b   :  { %v2978_v20 = vor.u32 %v3149_v21, %v2975_v35 }
 0x34c   :  { %v1772_v9 = vadd.f32 %v1771_v55, %v1754_v44  ;;  %v3150_v44 = vld [vmem:[%s4796_s6 + $0x84] sm:$0xf] }
 0x34d   :  { %2100 = vmatpush.bf16.msrb.mxu3 %v2978_v20  ;;  %v3138_v20 = vld [vmem:[%s4796_s6 + $0x20] sm:$0xf0] }
 0x34e   :  { %1929 = vmatpush.bf16.msrb.mxu1 %v1465_v23  ;;  %v2953_v23 = vld [vmem:[%s4796_s6 + $0x50] sm:$0xf] }
 0x351   :  { %1930 = vmatmul.bf16.vlgmr.msrb.gmra.mxu1 %v2910_v43  ;;  %v1756_v27 = vpop.f32.mrf.mxu1  ;;  %v1841_v25 = vpop.f32.mrf.mxu0  ;;  %v3146_v43 = vld [vmem:[%s4796_s6 + $0x60] sm:$0xf0] }
 0x352   :  { %v1757_v18 = vadd.f32 %v1756_v27, %v4262_v32  ;;  %v2955_v27 = vld [vmem:[%s4796_s6 + $0x64] sm:$0xf0] }
 0x354   :  { %v1775_v58 = vadd.f32 %v1774_v47, %v1757_v18  ;;  %v1810_v17 = vpop.f32.mrf.mxu2  ;;  %v3147_v18 = vld [vmem:[%s4796_s6 + $0x68] sm:$0xf0] }
 0x355   :  { %1899 = vmatmul.bf16.gmra.mxu3 %v1617_v8  ;;  %v2961_v8 = vld [vmem:[%s4796_s6 + $0x58] sm:$0xf] }
 0x359   :  { %v1758_v54 = vpop.f32.mrf.mxu1  ;;  %v1843_v50 = vpop.f32.mrf.mxu0 }
 0x35a   :  { %v2963_v54 = vld [vmem:[%s4796_s6 + $0x6c] sm:$0xf0] }
 0x35c   :  { %v1812_v26 = vpop.f32.mrf.mxu2 }
 0x35d   :  { %v3141_v26 = vld [vmem:[%s4796_s6 + $0x38] sm:$0xf0] }
 0x361   :  { %1935 = vmatmul.bf16.gmra.mxu1 %v1619_v28  ;;  %v1787_v63 = vpop.f32.mrf.mxu1  ;;  %v1846_v59 = vpop.f32.mrf.mxu0 }
 0x362   :  { %v1788_v62 = vadd.f32 %v1787_v63, %v1770_v57  ;;  %v2974_v57 = vor.u32 %v3151_v36, %v2973_v31  ;;  %v3139_v63 = vld [vmem:[%s4796_s6 + $0x2c] sm:$0xf]  ;;  %v2949_v36 = vld [vmem:[%s4796_s6 + $0x38] sm:$0xf] }
 0x364   :  { %v1806_v53 = vadd.f32 %v1805_v37, %v1788_v62  ;;  %v1877_v33 = vpop.f32.mrf.mxu2  ;;  %v2981_v37 = vld [vmem:[%s4796_s6 + $0x80] sm:$0xf]  ;;  %2084 = vmatpush.bf16.msrb.mxu2 %v2974_v57  ;;  %v3143_v57 = vld [vmem:[%s4796_s6 + $0x48] sm:$0xf0] }
 0x365   :  { %v2982_v56 = vor.u32 %v3152_v22, %v2981_v37  ;;  %v2950_v37 = vor.u32 %v3143_v57, %v2949_v36  ;;  %v3045_v36 = vld [vmem:[%s4798_s8 + $0x58] sm:$0xf0] }
 0x367   :  { %2116 = vmatpush.bf16.msra.mxu0 %v2982_v56 }
 0x369   :  { %v1789_v38 = vpop.f32.mrf.mxu1  ;;  %v1848_v13 = vpop.f32.mrf.mxu0 }
 0x36a   :  { %v1790_v30 = vadd.f32 %v1789_v38, %v1772_v9  ;;  %v2986_v9 = vor.u32 %v3150_v44, %v2983_v5  ;;  %v2943_v13 = vld [vmem:[%s4796_s6 + $0x44] sm:$0xf0] }
 0x36c   :  { %v1808_v49 = vadd.f32 %v1807_v14, %v1790_v30  ;;  %v1879_v32 = vpop.f32.mrf.mxu2  ;;  %2132 = vmatpush.bf16.msra.mxu1 %v2986_v9  ;;  %v2954_v14 = vor.u32 %v3146_v43, %v2953_v23 }
 0x36e   :  { %2085 = vmatpush.bf16.msrb.mxu2 %v2954_v14 }
 0x371   :  { %v1792_v48 = vpop.f32.mrf.mxu1  ;;  %v4297_v39 = vpop.f32.mrf.mxu0 }
 0x372   :  { %v1793_v10 = vadd.f32 %v1792_v48, %v1775_v58  ;;  %v2958_v58 = vor.u32 %v3144_v11, %v2955_v27  ;;  %v2913_v48 = vld [vmem:[%s4796_s6] sm:$0xf] }
 0x373   :  { %v1823_v0 = vpop.f32.mrf.mxu3 }
 0x374   :  { %v1811_v4 = vadd.f32 %v1810_v17, %v1793_v10  ;;  %v1824_v1 = vadd.f32 %v1823_v0, %v1806_v53  ;;  %v1882_v55 = vpop.f32.mrf.mxu2  ;;  %v3145_v17 = vld [vmem:[%s4796_s6 + $0x5c] sm:$0xf]  ;;  %2101 = vmatpush.bf16.msrb.mxu3 %v2958_v58  ;;  %v2935_v53 = vld [vmem:[%s4796_s6 + $0x3c] sm:$0xf0]  ;;  %v3136_v10 = vld [vmem:[%s4796_s6 + $0x10] sm:$0xf0] }
 0x375   :  { %v2966_v24 = vor.u32 %v3145_v17, %v2963_v54  ;;  %v2938_v38 = vor.u32 %v3139_v63, %v2935_v53  ;;  %v3134_v0 = vld [vmem:[%s4796_s6 + $0x4] sm:$0xf] }
 0x376   :  { %v1842_v16 = vadd.f32 %v1841_v25, %v1824_v1  ;;  %v2962_v25 = vor.u32 %v3147_v18, %v2961_v8  ;;  %v2915_v1 = vld [vmem:[%s4796_s6 + $0x14] sm:$0xf0] }
 0x377   :  { %2133 = vmatpush.bf16.msra.mxu1 %v2966_v24 }
 0x378   :  { %2117 = vmatpush.bf16.msra.mxu0 %v2962_v25  ;;  %2102 = vmatpush.bf16.msrb.mxu3 %v2938_v38 }
 0x379   :  { %v1794_v52 = vpop.f32.mrf.mxu1  ;;  %v1915_v28 = vpop.f32.mrf.mxu0 }
 0x37a   :  { %v2918_v52 = vor.u32 %v3134_v0, %v2915_v1 }
 0x37b   :  { %v1825_v3 = vpop.f32.mrf.mxu3 }
 0x37c   :  { %v1826_v51 = vadd.f32 %v1825_v3, %v1808_v49  ;;  %v1884_v47 = vpop.f32.mrf.mxu2  ;;  %v3140_v49 = vld [vmem:[%s4796_s6 + $0x34] sm:$0xf]  ;;  %2103 = vmatpush.bf16.msrb.mxu3 %v2918_v52 }
 0x37e   :  { %v1844_v41 = vadd.f32 %v1843_v50, %v1826_v51  ;;  %v2933_v50 = vld [vmem:[%s4796_s6 + $0x28] sm:$0xf]  ;;  %v3135_v51 = vld [vmem:[%s4796_s6 + $0xc] sm:$0xf] }
 0x37f   :  { %v2934_v62 = vor.u32 %v3141_v26, %v2933_v50 }
 0x381   :  { %v1859_v15 = vpop.f32.mrf.mxu1  ;;  %2086 = vmatpush.bf16.msrb.mxu2 %v2934_v62 }
 0x382   :  { %v1860_v12 = vadd.f32 %v1859_v15, %v1842_v16  ;;  %v2921_v16 = vld [vmem:[%s4796_s6 + $0x8] sm:$0xf]  ;;  %v1918_v15 = vpop.f32.mrf.mxu0 }
 0x383   :  { %v1828_v45 = vpop.f32.mrf.mxu3 }
 0x384   :  { %v1829_v2 = vadd.f32 %v1828_v45, %v1811_v4  ;;  %v4291_v60 = vadd.f32 %v1877_v33, %v1860_v12  ;;  %v3142_v33 = vld [vmem:[%s4796_s6 + $0x40] sm:$0xf0]  ;;  %v2914_v4 = vor.u32 %v3136_v10, %v2913_v48 }
 0x386   :  { %v1847_v42 = vadd.f32 %v1846_v59, %v1829_v2  ;;  %v2941_v59 = vld [vmem:[%s4796_s6 + $0x30] sm:$0xf]  ;;  %2087 = vmatpush.bf16.msrb.mxu2 %v2914_v4  ;;  %v2989_v2 = vld [vmem:[%s4796_s6 + $0x88] sm:$0xf] }
 0x387   :  { %v2942_v30 = vor.u32 %v3142_v33, %v2941_v59 }
 0x389   :  { %v1861_v61 = vpop.f32.mrf.mxu1  ;;  %2118 = vmatpush.bf16.msra.mxu0 %v2942_v30 }
 0x38a   :  { %v1862_v40 = vadd.f32 %v1861_v61, %v1844_v41  ;;  %v2923_v41 = vld [vmem:[%s4796_s6 + $0x1c] sm:$0xf0]  ;;  %v1920_v12 = vpop.f32.mrf.mxu0 }
 0x38b   :  { %v1830_v46 = vpop.f32.mrf.mxu3  ;;  %v2926_v47 = vor.u32 %v3135_v51, %v2923_v41  ;;  %v3168_v51 = vld [vmem:[%s4798_s8 + $0x6c] sm:$0xf0]  ;;  %v3059_v41 = vld [vmem:[%s4798_s8 + $0x68] sm:$0xf]  ;;  %v3167_v12 = vld [vmem:[%s4798_s8 + $0x6c] sm:$0xf] }
 0x38c   :  { %v4293_v29 = vadd.f32 %v1879_v32, %v1862_v40  ;;  %v2946_v32 = vor.u32 %v3140_v49, %v2943_v13  ;;  %v2969_v46 = vld [vmem:[%s4796_s6 + $0x60] sm:$0xf] }
 0x38e   :  { %2134 = vmatpush.bf16.msra.mxu1 %v2946_v32 }
 0x391   :  { %v1864_v6 = vpop.f32.mrf.mxu1 }
 0x392   :  { %v1865_v34 = vadd.f32 %v1864_v6, %v1847_v42  ;;  %2135 = vmatpush.bf16.msra.mxu1 %v2926_v47  ;;  %v3153_v42 = vld [vmem:[%s4796_s6 + $0x98] sm:$0xf0]  ;;  %v3148_v6 = vld [vmem:[%s4796_s6 + $0x70] sm:$0xf0] }
 0x393   :  { %v2990_v61 = vor.u32 %v3153_v42, %v2989_v2 }
 0x394   :  { %v4295_v7 = vadd.f32 %v1882_v55, %v1865_v34  ;;  %v3137_v55 = vld [vmem:[%s4796_s6 + $0x18] sm:$0xf0] }
 0x395   :  { %v2922_v3 = vor.u32 %v3137_v55, %v2921_v16  ;;  %2148 = vmatpush.bf16.msra.mxu2 %v2990_v61  ;;  %v3035_v61 = vld [vmem:[%s4798_s8 + $0x40] sm:$0xf] }
 0x397   :  { %2119 = vmatpush.bf16.msra.mxu0 %v2922_v3  ;;  %v3051_v3 = vld [vmem:[%s4798_s8 + $0x60] sm:$0xf] }
 0x398   :  { %v3052_v47 = vor.u32 %v3168_v51, %v3051_v3  ;;  %v2409_v3 = vld [vmem:[%s4800_s10 + $0x168] sm:$0xff] }
 0x399   :  { %v1866_v19 = vpop.f32.mrf.mxu1  ;;  %v2425_v51 = vld [vmem:[%s4800_s10 + $0x1e8] sm:$0xff] }
 0x39a   :  { %v2970_v19 = vor.u32 %v3148_v6, %v2969_v46  ;;  %2312 = vmatpush.bf16.msra.mxu3 %v3052_v47  ;;  %v3043_v46 = vld [vmem:[%s4798_s8 + $0x48] sm:$0xf]  ;;  %v2378_v47 = vld [vmem:[%s4800_s10 + $0x70] sm:$0xff] }
 0x39c   :  { %2149 = vmatpush.bf16.msra.mxu2 %v2970_v19  ;;  %v3163_v19 = vld [vmem:[%s4798_s8 + $0x4c] sm:$0xf] }
 0x39d   :  { %v3048_v57 = vor.u32 %v3163_v19, %v3045_v36  ;;  %v2406_v19 = vld [vmem:[%s4800_s10 + $0x150] sm:$0xff]  ;;  %v2375_v36 = vld [vmem:[%s4800_s10 + $0x58] sm:$0xff] }
 0x3a0   :  { %2150 = vmatpush.bf16.msra.mxu2 %v2950_v37  ;;  %v3027_v37 = vld [vmem:[%s4798_s8 + $0x28] sm:$0xf] }
 0x3c8   :  { %v1895_v45 = vpop.f32.mrf.mxu3 }
 0x3c9   :  { %v1896_v34 = vadd.f32 %v1895_v45, %v4291_v60  ;;  %v2929_v60 = vld [vmem:[%s4796_s6 + $0x10] sm:$0xf]  ;;  %v3061_v45 = vld [vmem:[%s4798_s8 + $0x78] sm:$0xf0] }
 0x3ca   :  { %v2930_v9 = vor.u32 %v3138_v20, %v2929_v60  ;;  %v3064_v42 = vor.u32 %v3167_v12, %v3061_v45  ;;  %v3161_v20 = vld [vmem:[%s4798_s8 + $0x34] sm:$0xf0]  ;;  %v2424_v12 = vld [vmem:[%s4800_s10 + $0x1e0] sm:$0xff] }
 0x3cb   :  { %v1914_v35 = vadd.f32 %v4297_v39, %v1896_v34  ;;  %v3165_v34 = vld [vmem:[%s4798_s8 + $0x54] sm:$0xf0] }
 0x3cc   :  { %2151 = vmatpush.bf16.msra.mxu2 %v2930_v9  ;;  %2351 = vmatpush.bf16.msrb.mxu1 %v3064_v42  ;;  %v3003_v9 = vld [vmem:[%s4798_s8] sm:$0xf] }
 0x3cd   :  { %v3179_v42 = vld [vmem:[%s4797_s7] ss:$0 sm:$0xff] }
 0x3ce   :  { %v1931_v40 = vpop.f32.mrf.mxu1 }
 0x3cf   :  { %v1932_v22 = vadd.f32 %v1931_v40, %v1914_v35  ;;  %v3164_v40 = vld [vmem:[%s4798_s8 + $0x4c] sm:$0xf0] }
 0x3d0   :  { %v1897_v31 = vpop.f32.mrf.mxu3  ;;  %v3036_v6 = vor.u32 %v3164_v40, %v3035_v61  ;;  %v3160_v35 = vld [vmem:[%s4798_s8 + $0x2c] sm:$0xf0]  ;;  %2352 = vmatpush.bf16.msrb.mxu1 %v3048_v57  ;;  %v2407_v40 = vld [vmem:[%s4800_s10 + $0x158] sm:$0xff] }
 0x3d1   :  { %v1898_v21 = vadd.f32 %v1897_v31, %v4293_v29  ;;  %v1940_v29 = vmax.f32 %v1932_v22, 0.0  ;;  %v3044_v31 = vor.u32 %v3165_v34, %v3043_v46  ;;  %v3159_v22 = vld [vmem:[%s4798_s8 + $0x2c] sm:$0xf]  ;;  %v2423_v46 = vld [vmem:[%s4800_s10 + $0x1d8] sm:$0xff] }
 0x3d2   :  { %2313 = vmatpush.bf16.msra.mxu3 %v3036_v6  ;;  %v2376_v6 = vld [vmem:[%s4800_s10 + $0x60] sm:$0xff] }
 0x3d3   :  { %v1916_v44 = vadd.f32 %v1915_v28, %v1898_v21  ;;  %v3019_v21 = vld [vmem:[%s4798_s8 + $0x20] sm:$0xf] }
 0x3d4   :  { %v3020_v60 = vor.u32 %v3160_v35, %v3019_v21  ;;  %v2421_v21 = vld [vmem:[%s4800_s10 + $0x1c8] sm:$0xff]  ;;  %v2374_v35 = vld [vmem:[%s4800_s10 + $0x50] sm:$0xff] }
 0x3d6   :  { %v1933_v5 = vpop.f32.mrf.mxu1  ;;  %2314 = vmatpush.bf16.msra.mxu3 %v3020_v60  ;;  %v2404_v60 = vld [vmem:[%s4800_s10 + $0x140] sm:$0xff] }
 0x3d7   :  { %v1934_v56 = vadd.f32 %v1933_v5, %v1916_v44  ;;  %v3029_v44 = vld [vmem:[%s4798_s8 + $0x38] sm:$0xf0]  ;;  %v3028_v5 = vor.u32 %v3161_v20, %v3027_v37  ;;  %v2420_v20 = vld [vmem:[%s4800_s10 + $0x1c0] sm:$0xff] }
 0x3d8   :  { %v1900_v23 = vpop.f32.mrf.mxu3 }
 0x3d9   :  { %v1941_v43 = vmax.f32 %v1934_v56, 0.0  ;;  %v1901_v11 = vadd.f32 %v1900_v23, %v4295_v7  ;;  %v3032_v56 = vor.u32 %v3159_v22, %v3029_v44  ;;  %v3156_v23 = vld [vmem:[%s4798_s8 + $0xc] sm:$0xf0]  ;;  %v2403_v44 = vld [vmem:[%s4800_s10 + $0x138] sm:$0xff] }
 0x3db   :  { %v1943_v39 = vpack.c.bf16 %v1941_v43, %v1940_v29  ;;  %v1919_v8 = vadd.f32 %v1918_v15, %v1901_v11  ;;  %v3169_v15 = vld [vmem:[%s4798_s8 + $0x74] sm:$0xf0]  ;;  %v3011_v29 = vld [vmem:[%s4798_s8 + $0x8] sm:$0xf]  ;;  %2353 = vmatpush.bf16.msrb.mxu1 %v3032_v56  ;;  %v3004_v43 = vor.u32 %v3156_v23, %v3003_v9  ;;  %v3155_v11 = vld [vmem:[%s4798_s8 + $0xc] sm:$0xf] }
 0x3dc   :  { %v3060_v2 = vor.u32 %v3169_v15, %v3059_v41  ;;  %v2379_v41 = vld [vmem:[%s4800_s10 + $0x78] sm:$0xff]  ;;  %v2408_v15 = vld [vmem:[%s4800_s10 + $0x160] sm:$0xff]  ;;  %v2373_v56 = vld [vmem:[%s4800_s10 + $0x48] sm:$0xff] }
 0x3dd   :  { %2991 = vmatmul.msk.bf16.vlgmr.msrb.gmra.mxu2 %vm2073_vm1, %v1943_v39  ;;  %2993 = vmatmul.msk.bf16.vlgmr.msrb.gmra.mxu3 %vm2073_vm1, %v1943_v39  ;;  %v2402_v9 = vld [vmem:[%s4800_s10 + $0x130] sm:$0xff]  ;;  %v2395_v23 = vld [vmem:[%s4800_s10 + $0xf8] sm:$0xff] }
 0x3de   :  { %2995 = vmatmul.msk.bf16.vlgmr.msra.gmra.mxu0 %vm2073_vm1, %v1943_v39  ;;  %2997 = vmatmul.msk.bf16.vlgmr.msra.gmra.mxu1 %vm2073_vm1, %v1943_v39  ;;  %v1936_v14 = vpop.f32.mrf.mxu1 }
 0x3df   :  { %v1937_v18 = vadd.f32 %v1936_v14, %v1919_v8  ;;  %2338 = vmatpush.bf16.msrb.mxu0 %v3060_v2  ;;  %v3013_v14 = vld [vmem:[%s4798_s8 + $0x18] sm:$0xf0]  ;;  %2315 = vmatpush.bf16.msra.mxu3 %v3004_v43  ;;  %v2377_v2 = vld [vmem:[%s4800_s10 + $0x68] sm:$0xff]  ;;  %v2372_v43 = vld [vmem:[%s4800_s10 + $0x40] sm:$0xff] }
 0x3e0   :  { %v1902_v27 = vpop.f32.mrf.mxu3  ;;  %v3016_v8 = vor.u32 %v3155_v11, %v3013_v14  ;;  %2432 = vmatpush.msrb.mxu2 %v2379_v41  ;;  %v2394_v11 = vld [vmem:[%s4800_s10 + $0xf0] sm:$0xff]  ;;  %v2417_v14 = vld [vmem:[%s4800_s10 + $0x1a8] sm:$0xff] }
 0x3e1   :  { %v1942_v25 = vmax.f32 %v1937_v18, 0.0  ;;  %v3166_v18 = vld [vmem:[%s4798_s8 + $0x64] sm:$0xf]  ;;  %v2381_v41 = vld [vmem:[%s4800_s10 + $0x88] sm:$0xff] }
 0x3e2   :  { %2354 = vmatpush.bf16.msrb.mxu1 %v3016_v8  ;;  %2433 = vmatpush.msrb.mxu2 %v2378_v47  ;;  %v2400_v8 = vld [vmem:[%s4800_s10 + $0x120] sm:$0xff] }
 0x3e3   :  { %v1944_v17 = vpack.c.bf16 %v1942_v25, %v1942_v25  ;;  %2339 = vmatpush.bf16.msrb.mxu0 %v3044_v31  ;;  %v2422_v31 = vld [vmem:[%s4800_s10 + $0x1d0] sm:$0xff]  ;;  %v2380_v47 = vld [vmem:[%s4800_s10 + $0x80] sm:$0xff] }
 0x3e4   :  { %2434 = vmatpush.msrb.mxu2 %v2377_v2 }
 0x3e6   :  { %v1938_v58 = vpop.f32.mrf.mxu1  ;;  %2435 = vmatpush.msrb.mxu2 %v2376_v6 }
 0x3e7   :  { %2340 = vmatpush.bf16.msrb.mxu0 %v3028_v5  ;;  %v3053_v58 = vld [vmem:[%s4798_s8 + $0x70] sm:$0xf0]  ;;  %v2419_v5 = vld [vmem:[%s4800_s10 + $0x1b8] sm:$0xff] }
 0x3e8   :  { %v3056_v25 = vor.u32 %v3166_v18, %v3053_v58  ;;  %2436 = vmatpush.msrb.mxu2 %v2375_v36  ;;  %v2416_v18 = vld [vmem:[%s4800_s10 + $0x1a0] sm:$0xff]  ;;  %v2370_v58 = vld [vmem:[%s4800_s10 + $0x30] sm:$0xff] }
 0x3ea   :  { %2325 = vmatpush.bf16.msrb.mxu3 %v3056_v25  ;;  %2437 = vmatpush.msrb.mxu2 %v2374_v35  ;;  %v2399_v25 = vld [vmem:[%s4800_s10 + $0x118] sm:$0xff] }
 0x3ec   :  { %2438 = vmatpush.msrb.mxu2 %v2373_v56  ;;  %v2517_v56 = vld [vmem:[%s4802_s12 + $0x20] sm:$0xff] }
 0x3ed   :  { %2992 = vmatmul.msk.bf16.gmra.mxu2 %vm2073_vm1, %v1944_v17  ;;  %2994 = vmatmul.msk.bf16.gmra.mxu3 %vm2073_vm1, %v1944_v17 }
 0x3ee   :  { %2996 = vmatmul.msk.bf16.gmra.mxu0 %vm2073_vm1, %v1944_v17  ;;  %2998 = vmatmul.msk.bf16.gmra.mxu1 %vm2073_vm1, %v1944_v17 }
 0x3ef   :  { %2439 = vmatpush.msrb.mxu2 %v2372_v43  ;;  %v2513_v43 = vld [vmem:[%s4802_s12] sm:$0xff] }
 0x3fd   :  { %2999 = vmatmul.msk.bf16.vlgmr.msra.gmra.mxu2 %vm2073_vm1, %v1943_v39  ;;  %v3157_v39 = vld [vmem:[%s4798_s8 + $0x14] sm:$0xf0] }
 0x3fe   :  { %v3012_v27 = vor.u32 %v3157_v39, %v3011_v29  ;;  %v2418_v29 = vld [vmem:[%s4800_s10 + $0x1b0] sm:$0xff]  ;;  %v2401_v39 = vld [vmem:[%s4800_s10 + $0x128] sm:$0xff] }
 0x400   :  { %2341 = vmatpush.bf16.msrb.mxu0 %v3012_v27  ;;  %v2371_v27 = vld [vmem:[%s4800_s10 + $0x38] sm:$0xff] }
 0x401   :  { %2440 = vmatpush.msrb.mxu2 %v2371_v27 }
 0x403   :  { %2441 = vmatpush.msrb.mxu2 %v2370_v58 }
 0x40d   :  { %3000 = vmatmul.msk.bf16.gmra.mxu2 %vm2073_vm1, %v1944_v17  ;;  %v3162_v17 = vld [vmem:[%s4798_s8 + $0x44] sm:$0xf] }
 0x45b   :  { %v2121_v7 = vpop.f32.mrf.mxu0  ;;  %v2137_v54 = vpop.f32.mrf.mxu1 }
 0x45c   :  { %v3037_v7 = vld [vmem:[%s4798_s8 + $0x50] sm:$0xf0] }
 0x45d   :  { %v3040_v54 = vor.u32 %v3162_v17, %v3037_v7  ;;  %v2415_v17 = vld [vmem:[%s4800_s10 + $0x198] sm:$0xff]  ;;  %v2369_v7 = vld [vmem:[%s4800_s10 + $0x28] sm:$0xff] }
 0x45e   :  { %2442 = vmatpush.msrb.mxu2 %v2369_v7 }
 0x45f   :  { %2326 = vmatpush.bf16.msrb.mxu3 %v3040_v54  ;;  %v2393_v54 = vld [vmem:[%s4800_s10 + $0xe8] sm:$0xff] }
 0x460   :  { %v4433_v24 = vpop.f32.mrf.mxu2  ;;  %v4435_v28 = vpop.f32.mrf.mxu3 }
 0x461   :  { %v2161_v50 = vrot.slane %v4433_v24, 2  ;;  %v2170_v26 = vrot.slane %v4435_v28, 6 }
 0x463   :  { %v4439_v63 = vpop.f32.mrf.mxu0  ;;  %v4441_v62 = vpop.f32.mrf.mxu1  ;;  %2171 = vrot.lane.b32.xlu2 %v2170_v26, %s3210_s3  ;;  %2162 = vrot.lane.b32.xlu1 %v2161_v50, %s3210_s3  ;;  %v3158_v50 = vld [vmem:[%s4798_s8 + $0x24] sm:$0xf]  ;;  %v3021_v26 = vld [vmem:[%s4798_s8 + $0x30] sm:$0xf0] }
 0x464   :  { %v2177_v53 = vrot.slane %v4439_v63, 2  ;;  %v2186_v38 = vrot.slane %v4441_v62, 6 }
 0x466   :  { %2178 = vrot.lane.b32.xlu0 %v2177_v53, %s3210_s3  ;;  %v3024_v53 = vor.u32 %v3158_v50, %v3021_v26  ;;  %v2398_v50 = vld [vmem:[%s4800_s10 + $0x110] sm:$0xff] }
 0x467   :  { %v2414_v26 = vld [vmem:[%s4800_s10 + $0x190] sm:$0xff] }
 0x468   :  { %v2091_v59 = vpop.f32.mrf.mxu2  ;;  %v2107_v33 = vpop.f32.mrf.mxu3  ;;  %2327 = vmatpush.bf16.msrb.mxu3 %v3024_v53  ;;  %v2368_v53 = vld [vmem:[%s4800_s10 + $0x20] sm:$0xff] }
 0x469   :  { %v3154_v59 = vld [vmem:[%s4798_s8 + $0x4] sm:$0xf]  ;;  %v3005_v33 = vld [vmem:[%s4798_s8 + $0x10] sm:$0xf0]  ;;  %2443 = vmatpush.msrb.mxu2 %v2368_v53 }
 0x46b   :  { %v2125_v30 = vpop.f32.mrf.mxu0  ;;  %v2141_v49 = vpop.f32.mrf.mxu1  ;;  %2187 = vrot.lane.b32.xlu1 %v2186_v38, %s3210_s3 }
 0x46c   :  { %v2167_v30 = vrot.slane %v4435_v28, 4 }
 0x470   :  { %v2093_v13 = vpop.f32.mrf.mxu2  ;;  %v2109_v32 = vpop.f32.mrf.mxu3 }
 0x471   :  { %v3008_v13 = vor.u32 %v3154_v59, %v3005_v33  ;;  %v2392_v59 = vld [vmem:[%s4800_s10 + $0xe0] sm:$0xff]  ;;  %v2397_v33 = vld [vmem:[%s4800_s10 + $0x108] sm:$0xff] }
 0x473   :  { %v2126_v48 = vpop.f32.mrf.mxu0  ;;  %v2142_v10 = vpop.f32.mrf.mxu1  ;;  %2328 = vmatpush.bf16.msrb.mxu3 %v3008_v13  ;;  %v2396_v13 = vld [vmem:[%s4800_s10 + $0x100] sm:$0xff] }
 0x478   :  { %v2094_v0 = vpop.f32.mrf.mxu2  ;;  %v2110_v4 = vpop.f32.mrf.mxu3 }
 0x479   :  { %v2411_v4 = vld [vmem:[%s4800_s10 + $0x178] sm:$0xff] }
 0x47a   :  { %2472 = vmatpush.msra.mxu0 %v2411_v4  ;;  %v2389_v4 = vld [vmem:[%s4800_s10 + $0xc8] sm:$0xff] }
 0x480   :  { %v2153_v1 = vpop.f32.mrf.mxu2 }
 0x481   :  { %v2427_v1 = vld [vmem:[%s4800_s10 + $0x1f8] sm:$0xff] }
 0x482   :  { %2492 = vmatpush.msra.mxu1 %v2427_v1  ;;  %v2364_v1 = vld [vmem:[%s4800_s10] sm:$0xff] }
 0x488   :  { %v2154_v16 = vpop.f32.mrf.mxu2 }
 0x489   :  { %v2426_v16 = vld [vmem:[%s4800_s10 + $0x1f0] sm:$0xff] }
 0x48a   :  { %2493 = vmatpush.msra.mxu1 %v2426_v16  ;;  %v2386_v16 = vld [vmem:[%s4800_s10 + $0xb0] sm:$0xff] }
 0x48c   :  { %2494 = vmatpush.msra.mxu1 %v2425_v51  ;;  %v2382_v51 = vld [vmem:[%s4800_s10 + $0x90] sm:$0xff] }
 0x48e   :  { %2495 = vmatpush.msra.mxu1 %v2424_v12 }
 0x490   :  { %v4449_v55 = vpop.f32.mrf.mxu2  ;;  %2496 = vmatpush.msra.mxu1 %v2423_v46 }
 0x492   :  { %2497 = vmatpush.msra.mxu1 %v2422_v31 }
 0x494   :  { %2498 = vmatpush.msra.mxu1 %v2421_v21 }
 0x496   :  { %2499 = vmatpush.msra.mxu1 %v2420_v20 }
 0x498   :  { %v2158_v52 = vpop.f32.mrf.mxu2  ;;  %2500 = vmatpush.msra.mxu1 %v2419_v5  ;;  %v2518_v5 = vld [vmem:[%s4802_s12 + $0x28] sm:$0xff] }
 0x49a   :  { %2501 = vmatpush.msra.mxu1 %v2418_v29  ;;  %v2514_v29 = vld [vmem:[%s4802_s12 + $0x8] sm:$0xff] }
 0x49c   :  { %2502 = vmatpush.msra.mxu1 %v2417_v14 }
 0x49e   :  { %2503 = vmatpush.msra.mxu1 %v2416_v18 }
 0x4a0   :  { %2504 = vmatpush.msra.mxu1 %v2415_v17 }
 0x4a2   :  { %2505 = vmatpush.msra.mxu1 %v2414_v26 }
 0x4bd   :  { %v2172_v48 = vpop.permute.xlu2 %2171 }
 0x4d5   :  { %v2163_v38 = vpop.permute.xlu1 %2162 }
 0x4d6   :  { %v2165_v49 = vadd.f32 %v2163_v38, %v4433_v24  ;;  %v2410_v24 = vld [vmem:[%s4800_s10 + $0x170] sm:$0xff]  ;;  %v2413_v38 = vld [vmem:[%s4800_s10 + $0x188] sm:$0xff] }
 0x4d7   :  { %2473 = vmatpush.msra.mxu0 %v2410_v24  ;;  %2506 = vmatpush.msra.mxu1 %v2413_v38  ;;  %v2388_v24 = vld [vmem:[%s4800_s10 + $0xc0] sm:$0xff]  ;;  %v3213_v38 = vmov 6.0  }
 0x4d8   :  { %v2169_v32 = vadd.f32 %v2167_v30, %v2165_v49  ;;  %v2179_v28 = vpop.permute.xlu0 %2178  ;;  %v2367_v30 = vld [vmem:[%s4800_s10 + $0x18] sm:$0xff]  ;;  %3182 = vrcp.f32 %v3213_v38 }
 0x4d9   :  { %2474 = vmatpush.msra.mxu0 %v2409_v3  ;;  %v2391_v49 = vld [vmem:[%s4800_s10 + $0xd8] sm:$0xff]  ;;  %2444 = vmatpush.msrb.mxu2 %v2367_v30 }
 0x4da   :  { %v2174_v10 = vadd.f32 %v2172_v48, %v2169_v32  ;;  %v2412_v32 = vld [vmem:[%s4800_s10 + $0x180] sm:$0xff]  ;;  %v2366_v48 = vld [vmem:[%s4800_s10 + $0x10] sm:$0xff]  ;;  %v2383_v3 = vld [vmem:[%s4800_s10 + $0x98] sm:$0xff] }
 0x4db   :  { %2475 = vmatpush.msra.mxu0 %v2408_v15  ;;  %2507 = vmatpush.msra.mxu1 %v2412_v32 }
 0x4dc   :  { %v2175_v0 = vadd.f32 %v2174_v10, %v4439_v63  ;;  %v2183_v63 = vrot.slane %v4441_v62, 4  ;;  %v2390_v10 = vld [vmem:[%s4800_s10 + $0xd0] sm:$0xff]  ;;  %2445 = vmatpush.msrb.mxu2 %v2366_v48 }
 0x4dd   :  { %v2188_v45 = vpop.permute.xlu1 %2187  ;;  %2476 = vmatpush.msra.mxu0 %v2407_v40 }
 0x4de   :  { %v2181_v52 = vadd.f32 %v2179_v28, %v2175_v0  ;;  %v2365_v0 = vld [vmem:[%s4800_s10 + $0x8] sm:$0xff]  ;;  %v2387_v28 = vld [vmem:[%s4800_s10 + $0xb8] sm:$0xff]  ;;  %v3183_v30 = vpop.eup %3182 }
 0x4df   :  { %2477 = vmatpush.msra.mxu0 %v2406_v19  ;;  %2446 = vmatpush.msrb.mxu2 %v2365_v0  ;;  %vm2561_vm3 = vweird.f32 %v3183_v30 }
 0x4e0   :  { %v2185_v62 = vadd.f32 %v2183_v63, %v2181_v52  ;;  %v2385_v63 = vld [vmem:[%s4800_s10 + $0xa8] sm:$0xff]  ;;  %v2384_v52 = vld [vmem:[%s4800_s10 + $0xa0] sm:$0xff] }
 0x4e1   :  { %2447 = vmatpush.msrb.mxu2 %v2364_v1 }
 0x4e2   :  { %v2190_v61 = vadd.f32 %v2188_v45, %v2185_v62  ;;  %v2215_v62 = vld [vmem:[%s4799_s9] sm:$0xf] }
 0x4e3   :  { %v2219_v15 = vperm.slane %v2215_v62, 2  ;;  %v2220_v12 = vperm.slane %v2215_v62, 3  ;;  %v2217_v46 = vperm.slane %v2215_v62, 0  ;;  %v2218_v21 = vperm.slane %v2215_v62, 1 }
 0x4e4   :  { %v2191_v34 = vadd.f32 %v2190_v61, %v4449_v55  ;;  %v2405_v55 = vld [vmem:[%s4800_s10 + $0x148] sm:$0xff] }
 0x4e5   :  { %2478 = vmatpush.msra.mxu0 %v2405_v55 }
 0x4e6   :  { %v2196_v57 = vadd.f32 %v3179_v42, %v2191_v34 }
 0x4e7   :  { %2479 = vmatpush.msra.mxu0 %v2404_v60 }
 0x4e8   :  { %v2197_v37 = vmax.f32 %v2196_v57, 0.0 }
 0x4e9   :  { %2480 = vmatpush.msra.mxu0 %v2403_v44  ;;  %v2519_v44 = vld [vmem:[%s4802_s12 + $0x30] sm:$0xff] }
 0x4ea   :  { %v2198_v22 = vpack.c.bf16 %v2197_v37, %v2197_v37 }
 0x4eb   :  { %2481 = vmatpush.msra.mxu0 %v2402_v9  ;;  %v2516_v9 = vld [vmem:[%s4802_s12 + $0x18] sm:$0xff] }
 0x4ec   :  { %3065 = vmatmul.msk.bf16.vlgmr.msra.gmra.mxu3 %vm2073_vm1, %v2198_v22  ;;  %3067 = vmatmul.msk.bf16.vlgmr.msrb.gmra.mxu0 %vm2073_vm1, %v2198_v22 }
 0x4ed   :  { %3068 = vmatmul.msk.bf16.vlgmr.msrb.gmra.mxu1 %vm2073_vm1, %v2198_v22  ;;  %2452 = vmatpush.msra.mxu3 %v2395_v23  ;;  %v2515_v23 = vld [vmem:[%s4802_s12 + $0x10] sm:$0xff] }
 0x4ee   :  { %2482 = vmatpush.msra.mxu0 %v2401_v39  ;;  %v3180_v39 = vld [vmem:[%s4801_s11] ss:$0 sm:$0xff]  ;;  %s3212_s11 = smov 127  }
 0x4ef   :  { %2453 = vmatpush.msra.mxu3 %v2394_v11 }
 0x4f0   :  { %2483 = vmatpush.msra.mxu0 %v2400_v8 }
 0x4f1   :  { %2454 = vmatpush.msra.mxu3 %v2393_v54  ;;  %v3211_v54 = vmov 0  }
 0x4f2   :  { %2484 = vmatpush.msra.mxu0 %v2399_v25  ;;  %3175 = vset.pattern.permute.xlu1 %v3211_v54 }
 0x4f3   :  { %2455 = vmatpush.msra.mxu3 %v2392_v59  ;;  %3176 = vset.pattern.permute.xlu0 %v3211_v54 }
 0x4f4   :  { %2485 = vmatpush.msra.mxu0 %v2398_v50  ;;  %v3181_v50 = vld [vmem:[%s4803_s13] ss:$0 sm:$0xff]  ;;  %s3214_s13 = smov [#allocation2]  }
 0x4f5   :  { %2456 = vmatpush.msra.mxu3 %v2391_v49  ;;  %v2557_v49 = vmul.f32 6.0, %v3183_v30  ;;  %s2580_s4 = sshll.u32 %s3214_s13, 4  ;;  %s2581_s4 = int_to_ptr.vmem [resolvable:$true] %s2580_s4 }
 0x4f6   :  { %2486 = vmatpush.msra.mxu0 %v2397_v33 }
 0x4f7   :  { %2457 = vmatpush.msra.mxu3 %v2390_v10 }
 0x4f8   :  { %2487 = vmatpush.msra.mxu0 %v2396_v13  ;;  %v2558_v13 = vsub.f32 1.0, %v2557_v49 }
 0x4f9   :  { %2458 = vmatpush.msra.mxu3 %v2389_v4 }
 0x4fa   :  { %v2559_v32 = vmul.f32 %v3183_v30, %v2558_v13 }
 0x4fb   :  { %2459 = vmatpush.msra.mxu3 %v2388_v24 }
 0x4fc   :  { %3066 = vmatmul.msk.bf16.vlgmr.msrb.gmra.mxu3 %vm2073_vm1, %v2198_v22  ;;  %v2520_v22 = vld [vmem:[%s4802_s12 + $0x38] sm:$0xff]  ;;  %v2560_v48 = vadd.f32 %v3183_v30, %v2559_v32 }
 0x4fd   :  { %2460 = vmatpush.msra.mxu3 %v2387_v28  ;;  %2536 = vmatpush.msra.mxu2 %v2520_v22 }
 0x4fe   :  { %v2562_v10 = vsel %vm2561_vm3, %v3183_v30, %v2560_v48 }
 0x4ff   :  { %2461 = vmatpush.msra.mxu3 %v2386_v16  ;;  %2537 = vmatpush.msra.mxu2 %v2519_v44 }
 0x501   :  { %2462 = vmatpush.msra.mxu3 %v2385_v63  ;;  %2538 = vmatpush.msra.mxu2 %v2518_v5 }
 0x503   :  { %2463 = vmatpush.msra.mxu3 %v2384_v52  ;;  %2539 = vmatpush.msra.mxu2 %v2517_v56 }
 0x505   :  { %2464 = vmatpush.msra.mxu3 %v2383_v3  ;;  %2540 = vmatpush.msra.mxu2 %v2516_v9 }
 0x507   :  { %2465 = vmatpush.msra.mxu3 %v2382_v51  ;;  %2541 = vmatpush.msra.mxu2 %v2515_v23 }
 0x509   :  { %2466 = vmatpush.msra.mxu3 %v2381_v41  ;;  %2542 = vmatpush.msra.mxu2 %v2514_v29 }
 0x50b   :  { %2467 = vmatpush.msra.mxu3 %v2380_v47  ;;  %2543 = vmatpush.msra.mxu2 %v2513_v43 }
 0x569   :  { %v2343_v45 = vpop.f32.mrf.mxu0 }
 0x56a   :  { %v2344_v2 = vadd.f32 %v2343_v45, %v2219_v15  ;;  %v2356_v42 = vpop.f32.mrf.mxu1 }
 0x56b   :  { %v2357_v61 = vadd.f32 %v2356_v42, %v2220_v12 }
 0x56c   :  { %v2362_v40 = vmax.f32 %v2344_v2, 0.0 }
 0x56d   :  { %v2363_v6 = vmax.f32 %v2357_v61, 0.0 }
 0x56e   :  { %2488 = vmatmul.f32.vlgmr.msra.gmra.mxu0 %v2362_v40 }
 0x56f   :  { %2508 = vmatmul.f32.vlgmr.msra.gmra.mxu1 %v2363_v6  ;;  %v2317_v34 = vpop.f32.mrf.mxu3 }
 0x570   :  { %v2318_v19 = vadd.f32 %v2317_v34, %v2217_v46 }
 0x571   :  { %v2345_v31 = vpop.f32.mrf.mxu0 }
 0x572   :  { %v2360_v36 = vmax.f32 %v2318_v19, 0.0  ;;  %v2358_v57 = vpop.f32.mrf.mxu1 }
 0x574   :  { %2448 = vmatmul.f32.vlgmr.msrb.gmra.mxu2 %v2360_v36 }
 0x577   :  { %v2319_v55 = vpop.f32.mrf.mxu3 }
 0x57f   :  { %v2330_v35 = vpop.f32.mrf.mxu3 }
 0x580   :  { %v2331_v37 = vadd.f32 %v2330_v35, %v2218_v21 }
 0x582   :  { %v2361_v60 = vmax.f32 %v2331_v37, 0.0 }
 0x584   :  { %2468 = vmatmul.f32.vlgmr.msra.gmra.mxu3 %v2361_v60 }
 0x587   :  { %v2332_v20 = vpop.f32.mrf.mxu3 }
 0x5eb   :  { %v2489_v18 = vpop.f32.mrf.mxu0 }
 0x5ec   :  { %v2509_v25 = vpop.f32.mrf.mxu1 }
 0x5f7   :  { %v2449_v11 = vpop.f32.mrf.mxu2 }
 0x5f8   :  { %v2450_v14 = vadd.f32 %v3180_v39, %v2449_v11 }
 0x607   :  { %v2469_v27 = vpop.f32.mrf.mxu3 }
 0x608   :  { %v2470_v8 = vadd.f32 %v2469_v27, %v2450_v14 }
 0x60a   :  { %v2490_v58 = vadd.f32 %v2489_v18, %v2470_v8 }
 0x60c   :  { %v2510_v17 = vadd.f32 %v2509_v25, %v2490_v58 }
 0x60e   :  { %v2512_v7 = vmax.f32 %v2510_v17, 0.0 }
 0x610   :  { %3069 = vmatmul.msk.f32.vlgmr.msra.gmra.mxu2 %vm2073_vm1, %v2512_v7 }
 0x693   :  { %v2545_v26 = vpop.f32.mrf.mxu2 }
 0x694   :  { %v2546_v53 = vadd.f32 %v3181_v50, %v2545_v26 }
 0x696   :  { %2566 = vperm.xlu1 %3175, %v2546_v53   ;;  %2549 = vrot.lane.b32.xlu2 %v2546_v53, %s3212_s11 }
 0x6f0   :  { %v2550_v59 = vpop.permute.xlu2 %2549 }
 0x6f1   :  { %v2553_v33 = vsel %vm2552_vm2, %v2550_v59, 0.0 }
 0x6f2   :  { %2554 = vadd.xlane.f32.xlu0 %v2553_v33 }
 0x708   :  { %v2567_v24 = vpop.permute.xlu1 %2566 }
 0x765   :  { %v2555_v0 = vpop.xlane.xlu0 %2554 }
 0x766   :  { %v2563_v4 = vmul.f32 %v2562_v10, %v2555_v0 }
 0x768   :  { %v2564_v1 = vsub.f32 %v2546_v53, %v2563_v4 }
 0x76a   :  { %v2569_v28 = vadd.f32 %v2567_v24, %v2564_v1 }
 0x76c   :  { %2571 = vrot.lane.b32.xlu2 %v2569_v28, %s3212_s11 }
 0x7c6   :  { %v2572_v16 = vpop.permute.xlu2 %2571 }
 0x7c7   :  { %2574 = vst.msk [vmem:[#allocation2] sm:$0x3] %vm2552_vm2, %v2572_v16 }
 0x7c8   :  { %2585 = dma.vmem_to_hbm [thread:$0]  %s2581_s4, 32, %s2583_s17, [#allocation3]  }
 0x7c9   :  { %3208 = dma.done.wait [#allocation3], 32  }
 0x7ca   :  { %3209 = vsyncadd [#allocation3], 4294967264 }
 0x7cb   :  { %2590 = vsyncpa [#allocation3], 1 }

</bundles_post_ra>
